<compile_context>
chip_gen: v7x
topology: tpu7x:2x2x1
jax: 0.10.0
libtpu: 0.0.40
codegen_flags: <defaults>
</compile_context>

<pallas_src>
import functools
import math

import jax
import jax.numpy as jnp
from jax import lax
from jax.experimental import pallas as pl
from jax.experimental.pallas import tpu as pltpu


def _l2_normalize_f32(x):
    # torch.nn.functional.normalize(eps=1e-12) equivalent (clamp on sum-of-squares).
    x = x.astype(jnp.float32)
    return x * lax.rsqrt(jnp.maximum(jnp.sum(x * x, axis=-1, keepdims=True), 1e-24))


# ----------------------------------------------------------------------------
# Pallas kernel.
# grid = (row tiles of d  [parallel],  column tiles of d  [arbitrary, inner]).
# Outputs are per-row-tile lane-dense partials; the tiny log/sum epilogue is
# done in plain JAX (keeps the row-tile axis megacore-parallel on v7x).
# ----------------------------------------------------------------------------
def _mnrl4_kernel(q_ref, d_row_ref, d_col_ref, den_out_ref, num_out_ref,
                  *, scale: float):
    i = pl.program_id(0)                 # d row-tile index (parallel, outer)
    k = pl.program_id(1)                 # d column-tile index (arbitrary, inner)

    TI, D = d_row_ref.shape
    TK = d_col_ref.shape[0]
    B = q_ref.shape[0]
    L = den_out_ref.shape[-1]            # lane width of the partial accumulators

    # ---- per-row-tile init: output blocks stay resident across the k sweep ----
    @pl.when(k == 0)
    def _init_den():
        den_out_ref[...] = jnp.zeros_like(den_out_ref)

    @pl.when(jnp.logical_and(i == 0, k == 0))
    def _numerator():
        # numerator_b = exp(scale * <qn_b, dn_b>); ref-slice only the first B rows.
        qn = q_ref[...].astype(jnp.float32)
        d_first = d_row_ref[0:B, :].astype(jnp.float32)
        num = jnp.exp(scale * jnp.sum(qn * d_first, axis=-1, keepdims=True))  # (B, 1)
        num_out_ref[...] = jnp.broadcast_to(num, num_out_ref.shape)

    @pl.when(jnp.logical_and(i != 0, k == 0))
    def _numerator_zero():
        num_out_ref[...] = jnp.zeros_like(num_out_ref)

    # ---- one (TI, TK) tile of exp(scale * dn_i . dn_j), native bf16 MXU --------
    dn_rows = d_row_ref[...]             # (TI, D) bf16 (pre-normalized)
    dn_cols = d_col_ref[...]             # (TK, D) bf16 (pre-normalized)
    dd = jnp.exp(scale * lax.dot_general(
        dn_rows, dn_cols,
        dimension_numbers=(((1,), (1,)), ((), ())),   # contract last dims, no transpose
        preferred_element_type=jnp.float32))          # (TI, TK) f32

    def fold_and_accumulate(tile):
        # Lane fold (TI, TK) -> (TI, L): pure VALU adds of 128-lane chunks;
        # the cross-lane reduction is deferred to the plain-JAX epilogue.
        acc = tile[:, 0:L]
        for c in range(1, TK // L):
            acc = acc + tile[:, c * L:(c + 1) * L]
        # Row fold (torch: offdiag_rowsum.reshape(-1, B).sum(0)) -> (B, L), VALU adds.
        grp = acc[0:B, :]
        for g in range(1, TI // B):
            grp = grp + acc[g * B:(g + 1) * B, :]
        den_out_ref[...] += grp

    # Only tiles intersecting the global diagonal pay for the eye-mask.
    row0 = i * TI
    col0 = k * TK
    intersects = jnp.logical_and(row0 < col0 + TK, col0 < row0 + TI)

    @pl.when(intersects)
    def _masked_tile():
        rids = row0 + lax.broadcasted_iota(jnp.int32, (TI, TK), 0)
        cids = col0 + lax.broadcasted_iota(jnp.int32, (TI, TK), 1)
        fold_and_accumulate(jnp.where(rids == cids, 0.0, dd))

    @pl.when(jnp.logical_not(intersects))
    def _plain_tile():
        fold_and_accumulate(dd)

    # den_q (qd row sums) needs a single pass over the column sweep: fold it
    # into the i == 0 partial so one accumulator holds den_q + den_d pieces.
    @pl.when(i == 0)
    def _qd():
        qd = jnp.exp(scale * lax.dot_general(
            q_ref[...], dn_cols,
            dimension_numbers=(((1,), (1,)), ((), ())),
            preferred_element_type=jnp.float32))      # (B, TK)
        acc = qd[:, 0:L]
        for c in range(1, TK // L):
            acc = acc + qd[:, c * L:(c + 1) * L]
        den_out_ref[...] += acc

    # TODO(synk): dd symmetry (triangular tiling) and Buffered(3) column streaming
    # are further optimizations not applied here.


# ----------------------------------------------------------------------------
# Tile-size / VMEM helpers.
# ----------------------------------------------------------------------------
def _pick_block_cols(M):
    # Lane-dim tiles must be multiples of 128 (256+ feeds the 256-wide MXU);
    # fall back to the full extent only for tiny M.
    for c in (512, 256, 128):
        if M % c == 0:
            return c
    return M


def _pick_block_rows(M, B):
    step = (B * 8) // math.gcd(B, 8)     # lcm(B, 8): sublane + fold-group alignment
    for c in (1024, 512, 256, 128, 64, 32, 16, 8):
        if c <= M and M % c == 0 and c % step == 0:
            return c
    return M                             # full extent is always legal (M % B == 0)


def _vmem_limit_bytes(block_rows, block_cols, B, D, acc_lanes):
    bf16, f32 = 2, 4
    tiles = (2 * block_rows * D * bf16 +          # row tile, double-buffered
             2 * block_cols * D * bf16 +          # col tile, double-buffered
             2 * B * D * bf16)                    # resident q
    temps = 4 * block_rows * block_cols * f32     # dd matmul / exp / mask temporaries
    outs = 2 * 2 * B * acc_lanes * f32
    est = tiles + temps + outs + (8 << 20)        # headroom for compiler scratch
    return int(min(max(est, 32 << 20), 48 << 20))


# ----------------------------------------------------------------------------
# Wrapper.
# ----------------------------------------------------------------------------
def mnrl4_loss_pallas(embeddings_q: jax.Array,
                      embeddings_d: jax.Array,
                      scale: float = 20.0,
                      *,
                      block_rows: int | None = None,
                      block_cols: int | None = None) -> jax.Array:
    """MultipleNegativesRankingLoss4 given query (B, D) and doc (M, D) embeddings."""
    B, D = embeddings_q.shape
    M, D2 = embeddings_d.shape
    assert D == D2
    # Same implicit constraint as torch's .reshape(-1, batchsize).
    assert M % B == 0, "number of doc embeddings must be a multiple of the batch size"

    if block_rows is None:
        block_rows = _pick_block_rows(M, B)
    if block_cols is None:
        block_cols = _pick_block_cols(M)
    assert M % block_rows == 0 and block_rows % B == 0 and block_rows >= B
    assert M % block_cols == 0

    acc_lanes = 128 if block_cols % 128 == 0 else block_cols
    grid = (M // block_rows, M // block_cols)
    gi = grid[0]

    # Normalize once in f32 (torch eps semantics), stream bf16 into the kernel.
    qn = _l2_normalize_f32(embeddings_q).astype(jnp.bfloat16)
    dn = _l2_normalize_f32(embeddings_d).astype(jnp.bfloat16)

    kernel = functools.partial(_mnrl4_kernel, scale=float(scale))

    den_part, num_part = pl.pallas_call(
        kernel,
        out_shape=(
            jax.ShapeDtypeStruct((gi, B, acc_lanes), jnp.float32),   # den partials
            jax.ShapeDtypeStruct((gi, B, acc_lanes), jnp.float32),   # numerator (row tile 0)
        ),
        grid_spec=pltpu.PrefetchScalarGridSpec(
            num_scalar_prefetch=0,
            grid=grid,
            in_specs=[
                pl.BlockSpec((B, D), lambda i, k: (0, 0)),               # qn (resident)
                pl.BlockSpec((block_rows, D), lambda i, k: (i, 0)),      # dn row tile
                pl.BlockSpec((block_cols, D), lambda i, k: (k, 0)),      # dn col tile (streamed)
            ],
            out_specs=[
                pl.BlockSpec((None, B, acc_lanes), lambda i, k: (i, 0, 0)),
                pl.BlockSpec((None, B, acc_lanes), lambda i, k: (i, 0, 0)),
            ],
        ),
        compiler_params=pltpu.CompilerParams(
            dimension_semantics=("parallel", "arbitrary"),
            vmem_limit_bytes=_vmem_limit_bytes(block_rows, block_cols, B, D, acc_lanes),
        ),
    )(qn, dn, dn)

    # Tiny epilogue in plain JAX (sanctioned by the review: keeps the row-tile
    # axis parallel across TensorCores); all O(M^2) work stayed in the kernel.
    den = den_part.sum(axis=(0, 2))           # (B,) = den_q + den_d
    num = num_part[0, :, 0]                   # (B,) numerator
    loss = ((jnp.log(den) - jnp.log(num)) * (1.0 / B)).sum()
    return loss


# ----------------------------------------------------------------------------
# Plain-JAX glue: tiny deterministic "sentence transformer" stand-in.
# ----------------------------------------------------------------------------
def tiny_sentence_encoder(token_embeddings: jax.Array, w: jax.Array) -> jax.Array:
    pooled = jnp.mean(token_embeddings, axis=1)          # (B, H)
    return pooled @ w                                    # (B, D)


def mnrl4_forward(sentence_features, w, scale: float = 20.0, **loss_kwargs) -> jax.Array:
    # TODO(synk): the real SentenceTransformer backbone is not translated; it is
    # replaced by a deterministic mean-pool + linear projection stand-in.
    reps = [tiny_sentence_encoder(f["token_embeddings"], w) for f in sentence_features]
    embeddings_q = reps[0]
    embeddings_d = jnp.concatenate(reps[1:], axis=0)
    return mnrl4_loss_pallas(embeddings_q, embeddings_d, scale=scale, **loss_kwargs)


# ----------------------------------------------------------------------------
# Pure-JAX reference (mirrors the PyTorch forward) for a sanity check.
# ----------------------------------------------------------------------------
def _reference_loss(embeddings_q, embeddings_d, scale=20.0):
    def norm(x):
        return x / jnp.maximum(jnp.linalg.norm(x, axis=-1, keepdims=True), 1e-12)

    q, d = norm(embeddings_q), norm(embeddings_d)
    qd = jnp.exp((q @ d.T) * scale)
    dd = jnp.exp((d @ d.T) * scale)
    B = q.shape[0]
    M = d.shape[0]
    mask_num = jnp.concatenate([jnp.eye(B), jnp.zeros((B, M - B))], axis=1)
    mask_djdi = jnp.ones((M, M)) - jnp.eye(M)
    numerator = (qd * mask_num).sum(-1)
    den_q = qd.sum(-1)
    den_d = (dd * mask_djdi).sum(-1).reshape(-1, B).sum(0)
    return (-(1.0 / B) * jnp.log(numerator / (den_q + den_d))).sum()


if __name__ == "__main__":
    key = jax.random.PRNGKey(0)
    keys = jax.random.split(key, 10)

    B, T, H, D = 64, 8, 32, 128   # batch, seq, token-hidden, embedding dim

    # Deterministic "model" parameters.
    w = jax.random.normal(keys[0], (H, D), dtype=jnp.float32) * 0.1

    # sentence_features: 1 query group + 8 doc groups  ->  M = 8 * 64 = 512.
    sentence_features = [
        {"token_embeddings": jax.random.normal(kk, (B, T, H), dtype=jnp.float32)}
        for kk in keys[1:]
    ]

    # Explicit tiles so the 2-D grid, partial-diagonal masking and the per-row-tile
    # partial outputs are all exercised (grid = (4, 2)).
    loss = mnrl4_forward(sentence_features, w, scale=20.0,
                         block_rows=128, block_cols=256)
    loss = jax.block_until_ready(loss)

    # Sanity check against the pure-f32 JAX reference (kernel matmuls are bf16).
    reps = [tiny_sentence_encoder(f["token_embeddings"], w) for f in sentence_features]
    ref = _reference_loss(reps[0], jnp.concatenate(reps[1:], axis=0), scale=20.0)
    assert jnp.allclose(loss, ref, rtol=3e-2, atol=3e-2), (loss, ref)

    print("KERNEL_OK")
</pallas_src>

<mosaic_0001>
module attributes {stable_mosaic.version = 11 : i64} {
  func.func @_mnrl4_kernel(%arg0: i32, %arg1: i32, %arg2: memref<64x128xbf16, #tpu.memory_space<vmem>>, %arg3: memref<128x128xbf16, #tpu.memory_space<vmem>>, %arg4: memref<256x128xbf16, #tpu.memory_space<vmem>>, %arg5: memref<1x64x128xf32, #tpu.memory_space<vmem>>, %arg6: memref<1x64x128xf32, #tpu.memory_space<vmem>>) attributes {dimension_semantics = [#tpu.dimension_semantics<parallel>, #tpu.dimension_semantics<arbitrary>], iteration_bounds = array<i64: 4, 2>, scalar_prefetch = 0 : i64, scratch_operands = 0 : i64, tpu.core_type = #tpu.core_type<tc>, window_params = [{pipeline_mode = #tpu.pipeline_mode<synchronous>, transform_indices = @transform_0, window_bounds = array<i64: 64, 128>}, {transform_indices = @transform_1, window_bounds = array<i64: 128, 128>}, {transform_indices = @transform_2, window_bounds = array<i64: 256, 128>}, {transform_indices = @transform_3, window_bounds = array<i64: 1, 64, 128>}, {transform_indices = @transform_4, window_bounds = array<i64: 1, 64, 128>}]} {
    %c0_i32 = arith.constant 0 : i32
    %0 = arith.cmpi eq, %arg1, %c0_i32 : i32
    %1 = arith.extui %0 : i1 to i32
    %c0_i32_0 = arith.constant 0 : i32
    %2 = arith.cmpi ne, %1, %c0_i32_0 : i32
    scf.if %2 {
      %cst_17 = arith.constant 0.000000e+00 : f32
      %34 = vector.broadcast %cst_17 : f32 to vector<64x128xf32>
      %c0_18 = arith.constant 0 : index
      %c0_19 = arith.constant 0 : index
      %c0_20 = arith.constant 0 : index
      %35 = vector.load %arg5[%c0_18, %c0_19, %c0_20] : memref<1x64x128xf32, #tpu.memory_space<vmem>>, vector<1x64x128xf32>
      %36 = vector.shape_cast %35 : vector<1x64x128xf32> to vector<64x128xf32>
      %37 = vector.shape_cast %34 : vector<64x128xf32> to vector<1x64x128xf32>
      tpu.vector_store %arg5[%c0_18, %c0_19, %c0_20], %37 {strides = array<i32>} : memref<1x64x128xf32, #tpu.memory_space<vmem>>, vector<1x64x128xf32>,
    } else {
    }
    %c0_i32_1 = arith.constant 0 : i32
    %3 = arith.cmpi eq, %arg0, %c0_i32_1 : i32
    %c0_i32_2 = arith.constant 0 : i32
    %4 = arith.cmpi eq, %arg1, %c0_i32_2 : i32
    %5 = arith.andi %3, %4 : i1
    %6 = arith.extui %5 : i1 to i32
    %c0_i32_3 = arith.constant 0 : i32
    %7 = arith.cmpi ne, %6, %c0_i32_3 : i32
    scf.if %7 {
      %c0_17 = arith.constant 0 : index
      %c0_18 = arith.constant 0 : index
      %34 = vector.load %arg2[%c0_17, %c0_18] : memref<64x128xbf16, #tpu.memory_space<vmem>>, vector<64x128xbf16>
      %35 = arith.extf %34 : vector<64x128xbf16> to vector<64x128xf32>
      %c0_19 = arith.constant 0 : index
      %c0_20 = arith.constant 0 : index
      %36 = vector.load %arg3[%c0_19, %c0_20] : memref<128x128xbf16, #tpu.memory_space<vmem>>, vector<64x128xbf16>
      %37 = arith.extf %36 : vector<64x128xbf16> to vector<64x128xf32>
      %38 = arith.mulf %35, %37 : vector<64x128xf32>
      %cst_21 = arith.constant dense<0.000000e+00> : vector<64xf32>
      %39 = vector.multi_reduction <add>, %38, %cst_21 [1] : vector<64x128xf32> to vector<64xf32>
      %40 = vector.shape_cast %39 : vector<64xf32> to vector<64x1xf32>
      %cst_22 = arith.constant 2.000000e+01 : f32
      %41 = vector.broadcast %cst_22 : f32 to vector<64x1xf32>
      %42 = arith.mulf %41, %40 : vector<64x1xf32>
      %43 = math.exp %42 : vector<64x1xf32>
      %44 = vector.shape_cast %43 : vector<64x1xf32> to vector<64x1xf32>
      %45 = vector.broadcast %44 : vector<64x1xf32> to vector<64x128xf32>
      %c0_23 = arith.constant 0 : index
      %c0_24 = arith.constant 0 : index
      %c0_25 = arith.constant 0 : index
      %46 = vector.load %arg6[%c0_23, %c0_24, %c0_25] : memref<1x64x128xf32, #tpu.memory_space<vmem>>, vector<1x64x128xf32>
      %47 = vector.shape_cast %46 : vector<1x64x128xf32> to vector<64x128xf32>
      %48 = vector.shape_cast %45 : vector<64x128xf32> to vector<1x64x128xf32>
      tpu.vector_store %arg6[%c0_23, %c0_24, %c0_25], %48 {strides = array<i32>} : memref<1x64x128xf32, #tpu.memory_space<vmem>>, vector<1x64x128xf32>,
    } else {
    }
    %c0_i32_4 = arith.constant 0 : i32
    %8 = arith.cmpi ne, %arg0, %c0_i32_4 : i32
    %c0_i32_5 = arith.constant 0 : i32
    %9 = arith.cmpi eq, %arg1, %c0_i32_5 : i32
    %10 = arith.andi %8, %9 : i1
    %11 = arith.extui %10 : i1 to i32
    %c0_i32_6 = arith.constant 0 : i32
    %12 = arith.cmpi ne, %11, %c0_i32_6 : i32
    scf.if %12 {
      %cst_17 = arith.constant 0.000000e+00 : f32
      %34 = vector.broadcast %cst_17 : f32 to vector<64x128xf32>
      %c0_18 = arith.constant 0 : index
      %c0_19 = arith.constant 0 : index
      %c0_20 = arith.constant 0 : index
      %35 = vector.load %arg6[%c0_18, %c0_19, %c0_20] : memref<1x64x128xf32, #tpu.memory_space<vmem>>, vector<1x64x128xf32>
      %36 = vector.shape_cast %35 : vector<1x64x128xf32> to vector<64x128xf32>
      %37 = vector.shape_cast %34 : vector<64x128xf32> to vector<1x64x128xf32>
      tpu.vector_store %arg6[%c0_18, %c0_19, %c0_20], %37 {strides = array<i32>} : memref<1x64x128xf32, #tpu.memory_space<vmem>>, vector<1x64x128xf32>,
    } else {
    }
    %c0 = arith.constant 0 : index
    %c0_7 = arith.constant 0 : index
    %13 = vector.load %arg3[%c0, %c0_7] : memref<128x128xbf16, #tpu.memory_space<vmem>>, vector<128x128xbf16>
    %c0_8 = arith.constant 0 : index
    %c0_9 = arith.constant 0 : index
    %14 = vector.load %arg4[%c0_8, %c0_9] : memref<256x128xbf16, #tpu.memory_space<vmem>>, vector<256x128xbf16>
    %cst = arith.constant dense<0.000000e+00> : vector<128x256xf32>
    %15 = tpu.matmul %13, %14, %cst {dimension_numbers = #tpu.dot_dimension_numbers<[1], [1], [0], [0], [0, 0, 1, 0], [], []>} : vector<128x128xbf16>, vector<256x128xbf16>, vector<128x256xf32> -> vector<128x256xf32>
    %cst_10 = arith.constant 2.000000e+01 : f32
    %16 = vector.broadcast %cst_10 : f32 to vector<128x256xf32>
    %17 = arith.mulf %16, %15 : vector<128x256xf32>
    %18 = math.exp %17 : vector<128x256xf32>
    %c128_i32 = arith.constant 128 : i32
    %19 = arith.muli %arg0, %c128_i32 : i32
    %c256_i32 = arith.constant 256 : i32
    %20 = arith.muli %arg1, %c256_i32 : i32
    %c256_i32_11 = arith.constant 256 : i32
    %21 = arith.addi %20, %c256_i32_11 : i32
    %22 = arith.cmpi slt, %19, %21 : i32
    %c128_i32_12 = arith.constant 128 : i32
    %23 = arith.addi %19, %c128_i32_12 : i32
    %24 = arith.cmpi slt, %20, %23 : i32
    %25 = arith.andi %22, %24 : i1
    %26 = arith.extui %25 : i1 to i32
    %c0_i32_13 = arith.constant 0 : i32
    %27 = arith.cmpi ne, %26, %c0_i32_13 : i32
    scf.if %27 {
      %34 = tpu.iota {dimensions = array<i32: 0>} : vector<128x256xi32>
      %35 = vector.broadcast %19 : i32 to vector<128x256xi32>
      %36 = arith.addi %35, %34 : vector<128x256xi32>
      %37 = tpu.iota {dimensions = array<i32: 1>} : vector<128x256xi32>
      %38 = vector.broadcast %20 : i32 to vector<128x256xi32>
      %39 = arith.addi %38, %37 : vector<128x256xi32>
      %40 = arith.cmpi eq, %36, %39 : vector<128x256xi32>
      %cst_17 = arith.constant 0.000000e+00 : f32
      %41 = vector.broadcast %cst_17 : f32 to vector<128x256xf32>
      %42 = arith.select %40, %41, %18 : vector<128x256xi1>, vector<128x256xf32>
      %43 = vector.extract_strided_slice %42 {offsets = [0, 0], sizes = [128, 128], strides = [1, 1]} : vector<128x256xf32> to vector<128x128xf32>
      %44 = vector.extract_strided_slice %42 {offsets = [0, 128], sizes = [128, 128], strides = [1, 1]} : vector<128x256xf32> to vector<128x128xf32>
      %45 = arith.addf %43, %44 : vector<128x128xf32>
      %46 = vector.extract_strided_slice %45 {offsets = [0, 0], sizes = [64, 128], strides = [1, 1]} : vector<128x128xf32> to vector<64x128xf32>
      %47 = vector.extract_strided_slice %45 {offsets = [64, 0], sizes = [64, 128], strides = [1, 1]} : vector<128x128xf32> to vector<64x128xf32>
      %48 = arith.addf %46, %47 : vector<64x128xf32>
      %c0_18 = arith.constant 0 : index
      %c0_19 = arith.constant 0 : index
      %c0_20 = arith.constant 0 : index
      %49 = vector.load %arg5[%c0_18, %c0_19, %c0_20] : memref<1x64x128xf32, #tpu.memory_space<vmem>>, vector<1x64x128xf32>
      %50 = vector.shape_cast %49 : vector<1x64x128xf32> to vector<64x128xf32>
      %51 = arith.addf %50, %48 : vector<64x128xf32>
      %c0_21 = arith.constant 0 : index
      %c0_22 = arith.constant 0 : index
      %c0_23 = arith.constant 0 : index
      %52 = vector.load %arg5[%c0_21, %c0_22, %c0_23] : memref<1x64x128xf32, #tpu.memory_space<vmem>>, vector<1x64x128xf32>
      %53 = vector.shape_cast %52 : vector<1x64x128xf32> to vector<64x128xf32>
      %54 = vector.shape_cast %51 : vector<64x128xf32> to vector<1x64x128xf32>
      tpu.vector_store %arg5[%c0_21, %c0_22, %c0_23], %54 {strides = array<i32>} : memref<1x64x128xf32, #tpu.memory_space<vmem>>, vector<1x64x128xf32>,
    } else {
    }
    %true = arith.constant true
    %28 = arith.xori %25, %true : i1
    %29 = arith.extui %28 : i1 to i32
    %c0_i32_14 = arith.constant 0 : i32
    %30 = arith.cmpi ne, %29, %c0_i32_14 : i32
    scf.if %30 {
      %34 = vector.extract_strided_slice %18 {offsets = [0, 0], sizes = [128, 128], strides = [1, 1]} : vector<128x256xf32> to vector<128x128xf32>
      %35 = vector.extract_strided_slice %18 {offsets = [0, 128], sizes = [128, 128], strides = [1, 1]} : vector<128x256xf32> to vector<128x128xf32>
      %36 = arith.addf %34, %35 : vector<128x128xf32>
      %37 = vector.extract_strided_slice %36 {offsets = [0, 0], sizes = [64, 128], strides = [1, 1]} : vector<128x128xf32> to vector<64x128xf32>
      %38 = vector.extract_strided_slice %36 {offsets = [64, 0], sizes = [64, 128], strides = [1, 1]} : vector<128x128xf32> to vector<64x128xf32>
      %39 = arith.addf %37, %38 : vector<64x128xf32>
      %c0_17 = arith.constant 0 : index
      %c0_18 = arith.constant 0 : index
      %c0_19 = arith.constant 0 : index
      %40 = vector.load %arg5[%c0_17, %c0_18, %c0_19] : memref<1x64x128xf32, #tpu.memory_space<vmem>>, vector<1x64x128xf32>
      %41 = vector.shape_cast %40 : vector<1x64x128xf32> to vector<64x128xf32>
      %42 = arith.addf %41, %39 : vector<64x128xf32>
      %c0_20 = arith.constant 0 : index
      %c0_21 = arith.constant 0 : index
      %c0_22 = arith.constant 0 : index
      %43 = vector.load %arg5[%c0_20, %c0_21, %c0_22] : memref<1x64x128xf32, #tpu.memory_space<vmem>>, vector<1x64x128xf32>
      %44 = vector.shape_cast %43 : vector<1x64x128xf32> to vector<64x128xf32>
      %45 = vector.shape_cast %42 : vector<64x128xf32> to vector<1x64x128xf32>
      tpu.vector_store %arg5[%c0_20, %c0_21, %c0_22], %45 {strides = array<i32>} : memref<1x64x128xf32, #tpu.memory_space<vmem>>, vector<1x64x128xf32>,
    } else {
    }
    %c0_i32_15 = arith.constant 0 : i32
    %31 = arith.cmpi eq, %arg0, %c0_i32_15 : i32
    %32 = arith.extui %31 : i1 to i32
    %c0_i32_16 = arith.constant 0 : i32
    %33 = arith.cmpi ne, %32, %c0_i32_16 : i32
    scf.if %33 {
      %c0_17 = arith.constant 0 : index
      %c0_18 = arith.constant 0 : index
      %34 = vector.load %arg2[%c0_17, %c0_18] : memref<64x128xbf16, #tpu.memory_space<vmem>>, vector<64x128xbf16>
      %cst_19 = arith.constant dense<0.000000e+00> : vector<64x256xf32>
      %35 = tpu.matmul %34, %14, %cst_19 {dimension_numbers = #tpu.dot_dimension_numbers<[1], [1], [0], [0], [0, 0, 1, 0], [], []>} : vector<64x128xbf16>, vector<256x128xbf16>, vector<64x256xf32> -> vector<64x256xf32>
      %cst_20 = arith.constant 2.000000e+01 : f32
      %36 = vector.broadcast %cst_20 : f32 to vector<64x256xf32>
      %37 = arith.mulf %36, %35 : vector<64x256xf32>
      %38 = math.exp %37 : vector<64x256xf32>
      %39 = vector.extract_strided_slice %38 {offsets = [0, 0], sizes = [64, 128], strides = [1, 1]} : vector<64x256xf32> to vector<64x128xf32>
      %40 = vector.extract_strided_slice %38 {offsets = [0, 128], sizes = [64, 128], strides = [1, 1]} : vector<64x256xf32> to vector<64x128xf32>
      %41 = arith.addf %39, %40 : vector<64x128xf32>
      %c0_21 = arith.constant 0 : index
      %c0_22 = arith.constant 0 : index
      %c0_23 = arith.constant 0 : index
      %42 = vector.load %arg5[%c0_21, %c0_22, %c0_23] : memref<1x64x128xf32, #tpu.memory_space<vmem>>, vector<1x64x128xf32>
      %43 = vector.shape_cast %42 : vector<1x64x128xf32> to vector<64x128xf32>
      %44 = arith.addf %43, %41 : vector<64x128xf32>
      %c0_24 = arith.constant 0 : index
      %c0_25 = arith.constant 0 : index
      %c0_26 = arith.constant 0 : index
      %45 = vector.load %arg5[%c0_24, %c0_25, %c0_26] : memref<1x64x128xf32, #tpu.memory_space<vmem>>, vector<1x64x128xf32>
      %46 = vector.shape_cast %45 : vector<1x64x128xf32> to vector<64x128xf32>
      %47 = vector.shape_cast %44 : vector<64x128xf32> to vector<1x64x128xf32>
      tpu.vector_store %arg5[%c0_24, %c0_25, %c0_26], %47 {strides = array<i32>} : memref<1x64x128xf32, #tpu.memory_space<vmem>>, vector<1x64x128xf32>,
    } else {
    }
    return
  }
  func.func @transform_0(%arg0: i32, %arg1: i32) -> (i32, i32) {
    %c0_i32 = arith.constant 0 : i32
    %c0_i32_0 = arith.constant 0 : i32
    %c0_i32_1 = arith.constant 0 : i32
    return %c0_i32, %c0_i32_0 : i32, i32
  }
  func.func @transform_1(%arg0: i32, %arg1: i32) -> (i32, i32) {
    %c0_i32 = arith.constant 0 : i32
    %c0_i32_0 = arith.constant 0 : i32
    return %arg0, %c0_i32 : i32, i32
  }
  func.func @transform_2(%arg0: i32, %arg1: i32) -> (i32, i32) {
    %c0_i32 = arith.constant 0 : i32
    %c0_i32_0 = arith.constant 0 : i32
    return %arg1, %c0_i32 : i32, i32
  }
  func.func @transform_3(%arg0: i32, %arg1: i32) -> (i32, i32, i32) {
    %c0_i32 = arith.constant 0 : i32
    %c0_i32_0 = arith.constant 0 : i32
    %c0_i32_1 = arith.constant 0 : i32
    return %arg0, %c0_i32, %c0_i32_0 : i32, i32, i32
  }
  func.func @transform_4(%arg0: i32, %arg1: i32) -> (i32, i32, i32) {
    %c0_i32 = arith.constant 0 : i32
    %c0_i32_0 = arith.constant 0 : i32
    %c0_i32_1 = arith.constant 0 : i32
    return %arg0, %c0_i32, %c0_i32_0 : i32, i32, i32
  }
}

</mosaic_0001>

<bundles_post_ra>
// kernel: tpu_custom_call.1
= control target key start
LH: loop header
LB: loop body
LE: loop exit
PB: predicated region body
PF: predicated region fallthrough
CT: control target
= control target key end

     0   :  { %s2984_s0 = inlined_call_operand.hbm [shape: bf16[64,128], index: 0, kind: input, shape index: {}]   ;;  %s2985_s1 = inlined_call_operand.hbm [shape: bf16[512,128], index: 1, kind: input, shape index: {}]   ;;  %s2986_s2 = inlined_call_operand.hbm [shape: bf16[512,128], index: 2, kind: input, shape index: {}]   ;;  %s2987_s3 = inlined_call_operand.hbm [shape: f32[4,64,128], index: 3, kind: output, shape index: {0}]   ;;  %s2988_s4 = inlined_call_operand.hbm [shape: f32[4,64,128], index: 4, kind: output, shape index: {1}]  }
   0x1   :  { %3022 = sst [smem:[#allocation28_spill]] %s2984_s0 }
   0x2   :  { %3023 = sst [smem:[#allocation29_spill]] %s2985_s1 }
   0x3   :  { %3024 = sst [smem:[#allocation30_spill]] %s2988_s4 }
   0x4   :  { %10 = vsyncpa [#allocation3], 0 }
   0x5   :  { %11 = vsyncpa [#allocation6], 0 }
   0x6   :  { %13 = vsyncpa [#allocation6 + $0x1], 0 }
   0x7   :  { %14 = vsyncpa [#allocation4], 0 }
   0x8   :  { %16 = vsyncpa [#allocation4 + $0x1], 0 }
   0x9   :  { %17 = vsyncpa [#allocation10], 0 }
   0xa   :  { %19 = vsyncpa [#allocation10 + $0x1], 0  ;;  %s2141_s15 = smov 0   ;;  %s2143_s16 = smov 0  }
   0xb   :  { %s2145_s17 = smov 0   ;;  %s2147_s18 = smov 0  }
   0xc   :  { %s2149_s19 = smov 0   ;;  %s2151_s20 = smov 0  }
   0xd   :  { %s2153_s21 = smov 0   ;;  %s2155_s22 = smov 0  }
   0xe   :  { %s2157_s23 = smov 0   ;;  %s2159_s24 = smov 0  }
   0xf   :  { %s2161_s25 = smov 0  }
  0x10 LB: > { %3025 = sst [smem:[#allocation16_spill]] %s2075_s18  ;;  %p72_p0 = scmp.ne.s32.totalorder %s2083_s20, %s2079_s19  ;;  %s2103_s25 = sphi %s2161_s25, %s25_s25   ;;  %s2099_s24 = sphi %s2159_s24, %s3088_s24   ;;  %s2095_s23 = sphi %s2157_s23, %s3087_s23   ;;  %s2091_s22 = sphi %s2155_s22, %s3086_s22   ;;  %s2087_s21 = sphi %s2153_s21, %s3085_s21   ;;  %s2083_s20 = sphi %s2151_s20, %s3084_s20   ;;  %s2079_s19 = sphi %s2149_s19, %s3083_s19   ;;  %s2075_s18 = sphi %s2147_s18, %s3082_s18   ;;  %s2071_s17 = sphi %s2145_s17, %s3081_s17   ;;  %s2067_s16 = sphi %s2143_s16, %s3080_s16   ;;  %s2063_s15 = sphi %s2141_s15, %s3079_s15  }
  0x11   : > { %p2990_p1 = scmp.eq.s32.totalorder %s2103_s25, 0  ;;  %p2989_p3 = scmp.lt.s32.totalorder %s2103_s25, 8 }
  0x12   : > { %s193_s28 = sand.u32 1, %s2103_s25   ;;  %s195_s29 = sand.u32 1, %s2083_s20  }
  0x13   : > { %p74_p2 = por %p2990_p1, %p72_p0  ;;  %s1402_s30 = sshll.u32 %s195_s29, 6 }
  0x14   : > { %s1454_s5 = sshll.u32 %s2099_s24, 10  ;;  %s3026_s1 = sld [smem:[#allocation29_spill]] }
  0x15   : > { %s197_s9 = scalar_lea.vmem [#allocation5], %s1402_s30  ;;  %p2217_p4 = pnand %p2989_p3, %p74_p2 }
  0x16   : > { %s204_s10 = sshll.u32 %s197_s9, 4  ;;  %s2223_s12 = scalar_lea.sflag [#allocation6], %s193_s28  ;;  %s2221_s10 = int_to_ptr.vmem [resolvable:$true] %s204_s10 }
  0x17   : > { %p1855_p6 = pneg %p2217_p4 }
  0x1a   : > { %s2213_s8 = scalar_lea.hbm %s3026_s1, %s1454_s5  ;;  %s1858_s30 = scalar_lea.hbm %s3026_s1, 4096 }
  0x1b   : > { %s1853_s13 = scalar_lea.hbm %s2213_s8, 1024  ;;  %p1859_p9 = scmp.lt.u32.totalorder %s2213_s8, %s3026_s1 }
  0x1c   : > { %p1854_p5 = scmp.ne.s32.totalorder %s2213_s8, %s1853_s13  ;;  %p1860_p10 = scmp.lt.u32.totalorder %s1858_s30, %s1853_s13 }
  0x1d   : > { %p1862_p12 = scmp.lt.u32.totalorder %s1853_s13, %s2213_s8 }
  0x1e   : > { %p1856_p7 = pnand %p1855_p6, %p1854_p5  ;;  %p1861_p11 = por %p1860_p10, %p1859_p9 }
  0x20   : > { %p1857_p8 = pneg %p1856_p7  ;;  %p1863_p13 = por %p1862_p12, %p1861_p11 }
  0x22   : > { %p1864_p2 = pnand %p1863_p13, %p1857_p8 }
  0x24   : > { %1867 = shalt.err (!%p1864_p2)
}
  0x25   : > { %s1868_s28 = scalar_lea.vmem %s2221_s10, 1024  ;;  %s2105_s7 = smov [#allocation5]  }
  0x26   : > { %p1869_p5 = scmp.ne.s32.totalorder %s2221_s10, %s1868_s28  ;;  %s1873_s9 = sshll.u32 %s2105_s7, 4  ;;  %s1874_s9 = int_to_ptr.vmem [resolvable:$false] %s1873_s9 }
  0x27   : > { %s1875_s14 = scalar_lea.vmem %s1874_s9, 2048  ;;  %p1876_p1 = scmp.lt.s32.totalorder %s2221_s10, %s1874_s9 }
  0x28   : > { %p1871_p7 = pnand %p1869_p5, %p1855_p6  ;;  %p1877_p9 = scmp.lt.s32.totalorder %s1875_s14, %s1868_s28 }
  0x2a   : > { %p1872_p3 = pneg %p1871_p7  ;;  %p1878_p10 = por %p1877_p9, %p1876_p1 }
  0x2c   : > { %p1879_p11 = pnand %p1878_p10, %p1872_p3 }
  0x2e   : > { %1882 = shalt.err (!%p1879_p11)
}
  0x2f   : > { %s2991_s13 = smov 64   ;;  %s2993_s29 = smov 4  }
  0x30   : > { %1603 = dma.hbm_to_vmem [thread:$0]  (!%p2217_p4), %s2213_s8, 1024, %s2221_s10, %s2223_s12, %s2991_s13, %s2991_s13, %s2993_s29  }
  0x31   : > { %s2255_s30 = sadd.s32 4294967295, %s2103_s25   ;;  %s1398_s5 = sadd.s32 4294967294, %s2103_s25  }
  0x32   : > { %p78_p1 = scmp.ne.s32.totalorder %s2079_s19, %s2075_s18  ;;  %p2998_p3 = scmp.eq.s32.totalorder %s2255_s30, 0 }
  0x33   : > { %p104_p6 = scmp.ne.s32.totalorder %s2067_s16, %s2063_s15  ;;  %p128_p8 = scmp.eq.s32.totalorder %s2255_s30, 7 }
  0x34   : > { %p2266_p12 = por %p2998_p3, %p78_p1  ;;  %p134_p4 = scmp.eq.s32.totalorder %s1398_s5, 7 }
  0x35   : > { %p2272_p13 = por %p104_p6, %p2998_p3  ;;  %p2279_p2 = por %p128_p8, %p72_p0 }
  0x36   : > { %s3028_s11 = scalar_select %p2266_p12, 1, 0 }
  0x37   : > { %s3029_s8 = scalar_select %p2272_p13, 1, 0 }
  0x38   : > { %s3030_s10 = scalar_select %p2279_p2, 1, 0 }
  0x39   : > { %p2283_p5 = por %p134_p4, %p78_p1  ;;  %p1399_p7 = scmp.ge.s32.totalorder %s2103_s25, 1 }
  0x3a   : > { %p167_p9 = scmp.lt.s32.totalorder %s2103_s25, 9  ;;  %s2108_s28 = smov [#allocation2]  }
  0x3b   : > { %s3031_s15 = scalar_select %p2283_p5, 1, 0 }
  0x3c   : > { %p2289_p10 = pnand %p1399_p7, %p167_p9  ;;  %s179_s7 = sshll.u32 %s2108_s28, 4  ;;  %s180_s7 = int_to_ptr.vmem [resolvable:$true] %s179_s7 }
  0x3d   : > { %3032 = sst [smem:[#allocation17_spill]] %s3031_s15  ;;  %s34_s9 = sadd.s32 1, %s2095_s23 }
  0x3e   : > { %s3033_s6 = scalar_select %p2289_p10, 1, 0 }
  0x3f   : > { %p1596_p11 = pneg %p2289_p10  ;;  %p2302_p1 = scmp.ge.s32.totalorder %s34_s9, 2 }
  0x40   : > { %s216_s26 = sand.u32 1, %s2071_s17   ;;  %s3036_s0 = sld [smem:[#allocation28_spill]] }
  0x41   : > { %p2298_p0 = pnand %p1596_p11, %p2998_p3 }
  0x42   : > { %s3035_s5 = scalar_select %p2302_p1, 1, 0 }
  0x43   : > { %p1885_p4 = pneg %p2298_p0 }
  0x46   : > { %s1883_s28 = scalar_lea.hbm %s3036_s0, 512 }
  0x47   : > { %p1884_p8 = scmp.ne.s32.totalorder %s3036_s0, %s1883_s28  ;;  %p1890_p11 = scmp.lt.u32.totalorder %s1883_s28, %s3036_s0 }
  0x49   : > { %p1886_p7 = pnand %p1885_p4, %p1884_p8 }
  0x4b   : > { %p1887_p9 = pneg %p1886_p7 }
  0x4d   : > { %p1892_p3 = pnand %p1890_p11, %p1887_p9 }
  0x4f   : > { %1895 = shalt.err (!%p1892_p3)
}
  0x50   : > { %s1896_s27 = scalar_lea.vmem %s180_s7, 512  ;;  %p1904_p13 = scmp.lt.s32.totalorder %s180_s7, %s180_s7 }
  0x51   : > { %p1897_p6 = scmp.ne.s32.totalorder %s180_s7, %s1896_s27  ;;  %p1905_p12 = scmp.lt.s32.totalorder %s1896_s27, %s1896_s27 }
  0x53   : > { %p1899_p5 = pnand %p1897_p6, %p1885_p4  ;;  %p1906_p10 = por %p1905_p12, %p1904_p13 }
  0x55   : > { %p1900_p2 = pneg %p1899_p5 }
  0x57   : > { %p1907_p1 = pnand %p1906_p10, %p1900_p2 }
  0x59   : > { %1910 = shalt.err (!%p1907_p1)
}
  0x5a   : > { %s3037_s1 = smov 4   ;;  %s3038_s13 = smov 64  }
  0x5b   : > { %1599 = dma.hbm_to_vmem [thread:$0]  (!%p2298_p0), %s3036_s0, 512, %s180_s7, [#allocation3], %s3038_s13, %s3038_s13, %s3037_s1  }
  0x5c   : > { %p3039_p3 = scmp.ne.s32.totalorder %s3035_s5, 0  ;;  %s3041_s4 = sadd.s32 1, %s2099_s24 }
  0x5d   : > { %p3042_p12 = scmp.eq.s32.totalorder %s2103_s25, 0  ;;  %p3043_p13 = scmp.ne.s32.totalorder %s2071_s17, %s2067_s16 }
  0x5e   : > { %s3090_s9 = smov (%p3039_p3, %s34_s9), 0  ;;  %s3092_s4 = smov (!%p3039_p3, %s3041_s4), %s2099_s24 }
  0x5f   : > { %3040 = sst [smem:[#allocation18_spill]] %s3090_s9  ;;  %s88_s18 = ssub.s32 %s2095_s23, %s3090_s9 }
  0x60   : > { %p100_p2 = por %p3043_p13, %p3042_p12  ;;  %p39_p5 = scmp.ge.s32.totalorder %s3092_s4, 4 }
  0x61   : > { %p89_p10 = scmp.eq.s32.totalorder %s88_s18, 0  ;;  %s1405_s27 = sshll.u32 %s216_s26, 7 }
  0x62   : > { %s1455_s14 = sshll.u32 %s2095_s23, 11  ;;  %s3094_s4 = smov (%p39_p5, %s3092_s4), 0 }
  0x63   : > { %3044 = sst [smem:[#allocation19_spill]] %s3094_s4  ;;  %s3045_s7 = sadd.s32 1, %s2071_s17 }
  0x64   : > { %s2351_s28 = scalar_select %p89_p10, %s2071_s17, %s3045_s7  }
  0x65   : > { %s62_s29 = ssub.s32 %s2099_s24, %s3094_s4  ;;  %s2358_s0 = scalar_lea.hbm %s2986_s2, %s1455_s14 }
  0x66   : > { %p63_p0 = scmp.eq.s32.totalorder %s62_s29, 0  ;;  %s218_s18 = scalar_lea.vmem [#allocation7], %s1405_s27 }
  0x67   : > { %s225_s26 = sshll.u32 %s218_s18, 4  ;;  %p3046_p1 = scmp.lt.s32.totalorder %s2103_s25, 8  ;;  %s2371_s26 = int_to_ptr.vmem [resolvable:$true] %s225_s26 }
  0x68   : > { %s3048_s7 = sadd.s32 1, %s2083_s20  ;;  %s1911_s14 = scalar_lea.hbm %s2358_s0, 2048 }
  0x69   : > { %p2362_p6 = pnand %p3046_p1, %p100_p2  ;;  %p1912_p8 = scmp.ne.s32.totalorder %s2358_s0, %s1911_s14 }
  0x6a   : > { %s2369_s29 = scalar_select %p63_p0, %s2083_s20, %s3048_s7  }
  0x6b   : > { %p1913_p4 = pneg %p2362_p6  ;;  %s1916_s15 = scalar_lea.hbm %s2986_s2, 4096 }
  0x6c   : > { %p1917_p11 = scmp.lt.u32.totalorder %s2358_s0, %s2986_s2  ;;  %p1918_p3 = scmp.lt.u32.totalorder %s1916_s15, %s1911_s14 }
  0x6d   : > { %p1914_p7 = pnand %p1913_p4, %p1912_p8  ;;  %p1920_p13 = scmp.lt.u32.totalorder %s1911_s14, %s2358_s0 }
  0x6e   : > { %p1919_p12 = por %p1918_p3, %p1917_p11 }
  0x6f   : > { %p1915_p9 = pneg %p1914_p7 }
  0x70   : > { %p1921_p2 = por %p1920_p13, %p1919_p12 }
  0x72   : > { %p1922_p5 = pnand %p1921_p2, %p1915_p9 }
  0x74   : > { %1925 = shalt.err (!%p1922_p5)
}
  0x75   : > { %s1926_s7 = scalar_lea.vmem %s2371_s26, 2048  ;;  %s2109_s27 = smov [#allocation7]  }
  0x76   : > { %p1927_p10 = scmp.ne.s32.totalorder %s2371_s26, %s1926_s7  ;;  %s1931_s5 = sshll.u32 %s2109_s27, 4  ;;  %s1932_s5 = int_to_ptr.vmem [resolvable:$false] %s1931_s5 }
  0x77   : > { %s1933_s4 = scalar_lea.vmem %s1932_s5, 4096  ;;  %p1934_p8 = scmp.lt.s32.totalorder %s2371_s26, %s1932_s5 }
  0x78   : > { %p1929_p0 = pnand %p1927_p10, %p1913_p4  ;;  %p1935_p7 = scmp.lt.s32.totalorder %s1933_s4, %s1926_s7 }
  0x7a   : > { %p1930_p1 = pneg %p1929_p0  ;;  %p1936_p11 = por %p1935_p7, %p1934_p8 }
  0x7c   : > { %p1937_p3 = pnand %p1936_p11, %p1930_p1 }
  0x7e   : > { %1940 = shalt.err (!%p1937_p3)
}
  0x7f   : > { %1606 = dma.hbm_to_vmem [thread:$0]  (!%p2362_p6), %s2358_s0, 2048, %s2371_s26, %s2223_s12, %s3038_s13, %s3038_s13, %s3037_s1  }
  0x80   : > { %p3049_p4 = scmp.ne.s32.totalorder %s3033_s6, 0 }
  0x82   : > { %237 = sbr.rel (%p3049_p4) target bundleno = 1075 (0x433), region = 32 }
  0x89   : > { %p3050_p9 = scmp.eq.s32.totalorder %s2255_s30, 0 }
  0x8b   : > { %2042 = dma.done.wait (%p3050_p9), [#allocation3], 512   ;;  %p3051_p12 = pmov %p3050_p9 }
  0x8c   : > { %s243_s9 = sand.u32 1, %s2255_s30   ;;  %s2410_s14 = sand.u32 1, %s2079_s19  }
  0x8d   : > { %2044 = vsyncadd (%p3051_p12), [#allocation3], 4294966784  ;;  %s1410_s15 = sshll.u32 %s2410_s14, 6  ;;  %s244_s18 = scalar_lea.sflag [#allocation6], %s243_s9 }
  0x8e   : > { %s2413_s7 = scalar_lea.vmem [#allocation5], %s1410_s15  ;;  %p3052_p6 = scmp.ne.s32.totalorder %s3028_s11, 0 }
  0x90   : > { %2046 = dma.done.wait (%p3052_p6), %s244_s18, 1024  }
  0x91   : > { %2048 = vsyncadd (%p3052_p6), %s244_s18, 4294966272  ;;  %s254_s0 = sand.u32 1, %s2067_s16   ;;  %p3053_p13 = scmp.ne.s32.totalorder %s3029_s8, 0 }
  0x92   : > { %s1411_s12 = sshll.u32 %s254_s0, 7 }
  0x93   : > { %s2420_s6 = scalar_lea.vmem [#allocation7], %s1411_s12 }
  0x94   : > { %2050 = dma.done.wait (%p3053_p13), %s244_s18, 2048  }
  0x95   : > { %2052 = vsyncadd (%p3053_p13), %s244_s18, 4294965248  ;;  %p294_p2 = scmp.eq.s32.totalorder %s2087_s21, 0  ;;  %s2427_s30 = scalar_lea.vmem [#allocation8], %s1410_s15 }
  0x96   : > { %s2429_s1 = scalar_lea.vmem [#allocation9], %s1410_s15  ;;  %p1414_p5 = scmp.ne.s32.totalorder %s2087_s21, 0 }
  0x97   : > { %v2110_v0 = vmov (!%p1414_p5), 0.0  }
  0x98   : > { %297 = sbr.rel (%p1414_p5) target bundleno = 159 (0x9f), region = 48  ;;  %298 = vst [vmem:[%s2427_s30] sm:$0xff] (!%p1414_p5), %v2110_v0  ;;  %299 = vst [vmem:[%s2427_s30 + $0x8] sm:$0xff] (!%p1414_p5), %v2110_v0 }
  0x99   : > { %300 = vst [vmem:[%s2427_s30 + $0x10] sm:$0xff] (!%p1414_p5), %v2110_v0  ;;  %301 = vst [vmem:[%s2427_s30 + $0x18] sm:$0xff] (!%p1414_p5), %v2110_v0 }
  0x9a   : > { %302 = vst [vmem:[%s2427_s30 + $0x20] sm:$0xff] (!%p1414_p5), %v2110_v0  ;;  %303 = vst [vmem:[%s2427_s30 + $0x28] sm:$0xff] (!%p1414_p5), %v2110_v0 }
  0x9b   : > { %304 = vst [vmem:[%s2427_s30 + $0x30] sm:$0xff] (!%p1414_p5), %v2110_v0  ;;  %305 = vst [vmem:[%s2427_s30 + $0x38] sm:$0xff] (!%p1414_p5), %v2110_v0 }
  0x9f PF: > { %p306_p10 = scmp.eq.s32.totalorder %s2091_s22, 0 }
  0xa1   : > { %p307_p0 = pnand %p306_p10, %p294_p2 }
  0xa2   : > { %v1490_v1 = vld [vmem:[#allocation2 + $0x8] sm:$0xff] (!%p307_p0)   ;;  %v1459_v3 = vld [vmem:[#allocation2] sm:$0xff] (!%p307_p0)   ;;  %v1491_v13 = vld [vmem:[#allocation2 + $0x10] sm:$0xff] (!%p307_p0)  }
  0xa3   : > { %310 = sbr.rel (%p307_p0) target bundleno = 339 (0x153), region = 52  ;;  %v1493_v2 = vld [vmem:[%s2413_s7 + $0x8] sm:$0xff] (!%p307_p0)   ;;  %v1464_v4 = vunpack.c.l.bf16 (!%p307_p0), %v1490_v1  ;;  %v1460_v6 = vunpack.c.l.bf16 (!%p307_p0), %v1459_v3  ;;  %v1475_v7 = vld [vmem:[%s2413_s7] sm:$0xff] (!%p307_p0)   ;;  %v1465_v8 = vunpack.c.h.bf16 (!%p307_p0), %v1490_v1  ;;  %v1461_v11 = vunpack.c.h.bf16 (!%p307_p0), %v1459_v3  ;;  %v1494_v14 = vld [vmem:[%s2413_s7 + $0x10] sm:$0xff] (!%p307_p0)  }
  0xa4   : > { %v1480_v5 = vunpack.c.l.bf16 (!%p307_p0), %v1493_v2  ;;  %v1476_v9 = vunpack.c.l.bf16 (!%p307_p0), %v1475_v7  ;;  %v1481_v10 = vunpack.c.h.bf16 (!%p307_p0), %v1493_v2  ;;  %v1477_v12 = vunpack.c.h.bf16 (!%p307_p0), %v1475_v7  ;;  %v1492_v23 = vld [vmem:[#allocation2 + $0x18] sm:$0xff] (!%p307_p0)  }
  0xa5   : > { %v1469_v18 = vunpack.c.h.bf16 (!%p307_p0), %v1491_v13  ;;  %v1485_v19 = vunpack.c.h.bf16 (!%p307_p0), %v1494_v14  ;;  %v1468_v21 = vunpack.c.l.bf16 (!%p307_p0), %v1491_v13  ;;  %v1484_v22 = vunpack.c.l.bf16 (!%p307_p0), %v1494_v14  ;;  %v1495_v24 = vld [vmem:[%s2413_s7 + $0x18] sm:$0xff] (!%p307_p0)  }
  0xa6   : > { %v345_v15 = vmul.f32 (!%p307_p0), %v1480_v5, %v1464_v4  ;;  %v343_v16 = vmul.f32 (!%p307_p0), %v1476_v9, %v1460_v6  ;;  %v346_v17 = vmul.f32 (!%p307_p0), %v1481_v10, %v1465_v8  ;;  %v344_v20 = vmul.f32 (!%p307_p0), %v1477_v12, %v1461_v11 }
  0xa7   : > { %v348_v25 = vmul.f32 (!%p307_p0), %v1485_v19, %v1469_v18  ;;  %v1473_v26 = vunpack.c.h.bf16 (!%p307_p0), %v1492_v23  ;;  %v1489_v27 = vunpack.c.h.bf16 (!%p307_p0), %v1495_v24  ;;  %v347_v28 = vmul.f32 (!%p307_p0), %v1484_v22, %v1468_v21 }
  0xa8   : > { %355 = vadd.xlane.f32.xlu1 (!%p307_p0), %v345_v15  ;;  %351 = vadd.xlane.f32.xlu0 (!%p307_p0), %v343_v16  ;;  %v1472_v29 = vunpack.c.l.bf16 (!%p307_p0), %v1492_v23  ;;  %v1488_v30 = vunpack.c.l.bf16 (!%p307_p0), %v1495_v24 }
  0xa9   : > { %v350_v31 = vmul.f32 (!%p307_p0), %v1489_v27, %v1473_v26 }
  0xaa   : > { %v349_v32 = vmul.f32 %v1488_v30, %v1472_v29 }
  0xac   : > { %357 = vadd.xlane.f32.xlu1 %v346_v17  ;;  %353 = vadd.xlane.f32.xlu0 %v344_v20 }
  0xb0   : > { %361 = vadd.xlane.f32.xlu1 %v348_v25  ;;  %359 = vadd.xlane.f32.xlu0 %v347_v28 }
  0xb4   : > { %365 = vadd.xlane.f32.xlu1 %v350_v31  ;;  %363 = vadd.xlane.f32.xlu0 %v349_v32 }
 0x135   : > { %v356_v33 = vpop.xlane.xlu1 %355  ;;  %v352_v35 = vpop.xlane.xlu0 %351 }
 0x136   : > { %v369_v34 = vmul.f32 20.0, %v356_v33  ;;  %v367_v36 = vmul.f32 20.0, %v352_v35 }
 0x138   : > { %v379_v37 = vmul.f32 1.442695, %v369_v34  ;;  %v375_v38 = vmul.f32 1.442695, %v367_v36 }
 0x139   : > { %v358_v39 = vpop.xlane.xlu1 %357  ;;  %v354_v41 = vpop.xlane.xlu0 %353 }
 0x13a   : > { %1713 = vpow2.f32 %v379_v37  ;;  %v370_v40 = vmul.f32 20.0, %v358_v39  ;;  %v368_v42 = vmul.f32 20.0, %v354_v41 }
 0x13b   : > { %1715 = vpow2.f32 %v375_v38 }
 0x13c   : > { %v381_v43 = vmul.f32 1.442695, %v370_v40  ;;  %v377_v44 = vmul.f32 1.442695, %v368_v42 }
 0x13d   : > { %v362_v45 = vpop.xlane.xlu1 %361  ;;  %v360_v47 = vpop.xlane.xlu0 %359 }
 0x13e   : > { %1717 = vpow2.f32 %v381_v43  ;;  %v372_v46 = vmul.f32 20.0, %v362_v45  ;;  %v371_v48 = vmul.f32 20.0, %v360_v47 }
 0x13f   : > { %1719 = vpow2.f32 %v377_v44 }
 0x140   : > { %v385_v49 = vmul.f32 1.442695, %v372_v46  ;;  %v383_v50 = vmul.f32 1.442695, %v371_v48 }
 0x141   : > { %v366_v51 = vpop.xlane.xlu1 %365  ;;  %v364_v53 = vpop.xlane.xlu0 %363 }
 0x142   : > { %1721 = vpow2.f32 %v385_v49  ;;  %v374_v52 = vmul.f32 20.0, %v366_v51  ;;  %v373_v54 = vmul.f32 20.0, %v364_v53 }
 0x143   : > { %1723 = vpow2.f32 %v383_v50 }
 0x144   : > { %v1714_v55 = vpop.eup %1713  ;;  %v389_v56 = vmul.f32 1.442695, %v374_v52  ;;  %v387_v58 = vmul.f32 1.442695, %v373_v54 }
 0x145   : > { %v1716_v57 = vpop.eup %1715  ;;  %393 = vst [vmem:[%s2429_s1 + $0x10] sm:$0xff] %v1714_v55 }
 0x146   : > { %391 = vst [vmem:[%s2429_s1] sm:$0xff] %v1716_v57  ;;  %1725 = vpow2.f32 %v389_v56 }
 0x147   : > { %1727 = vpow2.f32 %v387_v58 }
 0x148   : > { %v1718_v59 = vpop.eup %1717 }
 0x149   : > { %v1720_v60 = vpop.eup %1719  ;;  %394 = vst [vmem:[%s2429_s1 + $0x18] sm:$0xff] %v1718_v59 }
 0x14a   : > { %392 = vst [vmem:[%s2429_s1 + $0x8] sm:$0xff] %v1720_v60 }
 0x14c   : > { %v1722_v61 = vpop.eup %1721 }
 0x14d   : > { %v1724_v62 = vpop.eup %1723  ;;  %396 = vst [vmem:[%s2429_s1 + $0x28] sm:$0xff] %v1722_v61 }
 0x14e   : > { %395 = vst [vmem:[%s2429_s1 + $0x20] sm:$0xff] %v1724_v62 }
 0x150   : > { %v1726_v63 = vpop.eup %1725 }
 0x151   : > { %v1728_v0 = vpop.eup %1727  ;;  %398 = vst [vmem:[%s2429_s1 + $0x38] sm:$0xff] %v1726_v63 }
 0x152   : > { %397 = vst [vmem:[%s2429_s1 + $0x30] sm:$0xff] %v1728_v0 }
 0x153 PF: > { %p399_p1 = scmp.ne.s32.totalorder %s2091_s22, 0 }
 0x155   : > { %p400_p8 = pnand %p399_p1, %p294_p2 }
 0x156   : > { %v2111_v1 = vmov (!%p400_p8), 0.0  }
 0x157   : > { %403 = sbr.rel (%p400_p8) target bundleno = 350 (0x15e), region = 56  ;;  %404 = vst [vmem:[%s2429_s1] sm:$0xff] (!%p400_p8), %v2111_v1  ;;  %405 = vst [vmem:[%s2429_s1 + $0x8] sm:$0xff] (!%p400_p8), %v2111_v1 }
 0x158   : > { %406 = vst [vmem:[%s2429_s1 + $0x10] sm:$0xff] (!%p400_p8), %v2111_v1  ;;  %407 = vst [vmem:[%s2429_s1 + $0x18] sm:$0xff] (!%p400_p8), %v2111_v1 }
 0x159   : > { %408 = vst [vmem:[%s2429_s1 + $0x20] sm:$0xff] (!%p400_p8), %v2111_v1  ;;  %409 = vst [vmem:[%s2429_s1 + $0x28] sm:$0xff] (!%p400_p8), %v2111_v1 }
 0x15a   : > { %410 = vst [vmem:[%s2429_s1 + $0x30] sm:$0xff] (!%p400_p8), %v2111_v1  ;;  %411 = vst [vmem:[%s2429_s1 + $0x38] sm:$0xff] (!%p400_p8), %v2111_v1 }
 0x15e PF: > { %v2469_v2 = vld [vmem:[%s2420_s6 + $0x40] sm:$0xff]   ;;  %v2477_v4 = vld [vmem:[%s2420_s6 + $0x48] sm:$0xff]   ;;  %v2487_v6 = vld [vmem:[%s2420_s6 + $0x50] sm:$0xff]   ;;  %s2557_s11 = sshll.u32 %s2091_s22, 7  ;;  %s2560_s8 = sshll.u32 %s2087_s21, 8 }
 0x15f   : > { %v2472_v3 = vld [vmem:[%s2420_s6] sm:$0xff]   ;;  %1496 = vmatprep.subr.bf16.mxu0 %v2469_v2  ;;  %1552 = vmatprep.subr.bf16.mxu1 %v2469_v2  ;;  %v2484_v5 = vld [vmem:[%s2420_s6 + $0x8] sm:$0xff]   ;;  %v2494_v7 = vld [vmem:[%s2420_s6 + $0x10] sm:$0xff]   ;;  %s815_s13 = sadd.s32 256, %s2560_s8  ;;  %s817_s26 = sadd.s32 128, %s2557_s11 }
 0x160   : > { %1497 = vmatpush3.bf16.xpose.msra.mxu0 %v2472_v3  ;;  %1560 = vmatpush3.bf16.xpose.msra.mxu1 %v2472_v3  ;;  %v2497_v8 = vld [vmem:[%s2420_s6 + $0x58] sm:$0xff]   ;;  %v1745_v9 = vld [vmem:[%s2413_s7] sm:$0xff]   ;;  %v2519_v14 = vld [vmem:[%s2420_s6 + $0x68] sm:$0xff]   ;;  %p2565_p7 = scmp.lt.s32.totalorder %s2557_s11, %s815_s13  ;;  %p2570_p11 = scmp.lt.s32.totalorder %s2560_s8, %s817_s26 }
 0x161   : > { %1498 = vmatprep.subr.bf16.mxu0 %v2477_v4  ;;  %1553 = vmatprep.subr.bf16.mxu1 %v2477_v4  ;;  %v1746_v10 = vld [vmem:[%s2413_s7 + $0x20] sm:$0xff]   ;;  %v2506_v11 = vld [vmem:[%s2420_s6 + $0x18] sm:$0xff]   ;;  %3056 = vst [vmem:[#allocation22_spill] sm:$0xff] %v2519_v14  ;;  %v2526_v15 = vld [vmem:[%s2420_s6 + $0x28] sm:$0xff]  }
 0x162   : > { %1512 = vmatprep.mubr.bf16.mxu0 %v1745_v9  ;;  %1520 = vmatprep.mubr.bf16.mxu1 %v1746_v10  ;;  %v2509_v12 = vld [vmem:[%s2420_s6 + $0x60] sm:$0xff]   ;;  %3057 = vst [vmem:[#allocation23_spill] sm:$0xff] %v2526_v15  ;;  %v2529_v16 = vld [vmem:[%s2420_s6 + $0x70] sm:$0xff]   ;;  %v2539_v18 = vld [vmem:[%s2420_s6 + $0x78] sm:$0xff]   ;;  %p819_p3 = pnand %p2570_p11, %p2565_p7 }
 0x163   : > { %3054 = vst [vmem:[#allocation20_spill] sm:$0xff] %v2509_v12  ;;  %v2516_v13 = vld [vmem:[%s2420_s6 + $0x20] sm:$0xff]   ;;  %3058 = vst [vmem:[#allocation24_spill] sm:$0xff] %v2529_v16  ;;  %v2536_v17 = vld [vmem:[%s2420_s6 + $0x30] sm:$0xff]  }
 0x164   : > { %3055 = vst [vmem:[#allocation21_spill] sm:$0xff] %v2516_v13  ;;  %3059 = vst [vmem:[#allocation25_spill] sm:$0xff] %v2536_v17  ;;  %v2546_v19 = vld [vmem:[%s2420_s6 + $0x38] sm:$0xff]   ;;  %v1747_v20 = vld [vmem:[%s2413_s7 + $0x8] sm:$0xff]  }
 0x165   : > { %3060 = vst [vmem:[#allocation26_spill] sm:$0xff] %v2539_v18  ;;  %3061 = vst [vmem:[#allocation27_spill] sm:$0xff] %v2546_v19  ;;  %v1748_v21 = vld [vmem:[%s2413_s7 + $0x28] sm:$0xff]   ;;  %v1749_v22 = vld [vmem:[%s2413_s7 + $0x10] sm:$0xff]  }
 0x166   : > { %v1750_v23 = vld [vmem:[%s2413_s7 + $0x30] sm:$0xff]   ;;  %v1751_v24 = vld [vmem:[%s2413_s7 + $0x18] sm:$0xff]  }
 0x167   : > { %v1752_v25 = vld [vmem:[%s2413_s7 + $0x38] sm:$0xff]  }
 0x168   : > { %1499 = vmatpush3.bf16.xpose.msra.mxu0 %v2484_v5  ;;  %1561 = vmatpush3.bf16.xpose.msra.mxu1 %v2484_v5 }
 0x169   : > { %1500 = vmatprep.subr.bf16.mxu0 %v2487_v6  ;;  %1554 = vmatprep.subr.bf16.mxu1 %v2487_v6 }
 0x170   : > { %1501 = vmatpush3.bf16.xpose.msra.mxu0 %v2494_v7  ;;  %1562 = vmatpush3.bf16.xpose.msra.mxu1 %v2494_v7 }
 0x171   : > { %1502 = vmatprep.subr.bf16.mxu0 %v2497_v8  ;;  %1555 = vmatprep.subr.bf16.mxu1 %v2497_v8 }
 0x178   : > { %1503 = vmatpush3.bf16.xpose.msra.mxu0 %v2506_v11  ;;  %1563 = vmatpush3.bf16.xpose.msra.mxu1 %v2506_v11 }
 0x179   : > { %1504 = vmatprep.subr.bf16.mxu0 %v2509_v12  ;;  %1556 = vmatprep.subr.bf16.mxu1 %v2509_v12 }
 0x180   : > { %1505 = vmatpush3.bf16.xpose.msra.mxu0 %v2516_v13  ;;  %1564 = vmatpush3.bf16.xpose.msra.mxu1 %v2516_v13 }
 0x181   : > { %1506 = vmatprep.subr.bf16.mxu0 %v2519_v14  ;;  %1557 = vmatprep.subr.bf16.mxu1 %v2519_v14  ;;  %v953_v14 = vld [vmem:[%s2427_s30 + $0x10] sm:$0xff] (!%p819_p3) }
 0x188   : > { %1507 = vmatpush3.bf16.xpose.msra.mxu0 %v2526_v15  ;;  %1565 = vmatpush3.bf16.xpose.msra.mxu1 %v2526_v15 }
 0x189   : > { %1508 = vmatprep.subr.bf16.mxu0 %v2529_v16  ;;  %1558 = vmatprep.subr.bf16.mxu1 %v2529_v16 }
 0x190   : > { %1509 = vmatpush3.bf16.xpose.msra.mxu0 %v2536_v17  ;;  %1566 = vmatpush3.bf16.xpose.msra.mxu1 %v2536_v17 }
 0x191   : > { %1510 = vmatprep.subr.bf16.mxu0 %v2539_v18  ;;  %1559 = vmatprep.subr.bf16.mxu1 %v2539_v18 }
 0x198   : > { %1511 = vmatpush3.bf16.xpose.msra.mxu0 %v2546_v19  ;;  %1567 = vmatpush3.bf16.xpose.msra.mxu1 %v2546_v19 }
 0x19f   : > { %1513 = vmatmul.mubr.bf16.vlgmr.msra.gmra.mrb[0].mxu0 %v1745_v9  ;;  %1521 = vmatmul.mubr.bf16.vlgmr.msra.gmra.mrb[0].mxu1 %v1746_v10 }
 0x1a0   : > { %1514 = vmatprep.mubr.bf16.mxu0 %v1747_v20  ;;  %1522 = vmatprep.mubr.bf16.mxu1 %v1748_v21 }
 0x1a7   : > { %1515 = vmatmul.mubr.bf16.gmra.mrb[4].mxu0 %v1747_v20  ;;  %1523 = vmatmul.mubr.bf16.gmra.mrb[4].mxu1 %v1748_v21 }
 0x1a8   : > { %1516 = vmatprep.mubr.bf16.mxu0 %v1749_v22  ;;  %1524 = vmatprep.mubr.bf16.mxu1 %v1750_v23 }
 0x1af   : > { %1517 = vmatmul.mubr.bf16.gmra.mrb[8].mxu0 %v1749_v22  ;;  %1525 = vmatmul.mubr.bf16.gmra.mrb[8].mxu1 %v1750_v23 }
 0x1b0   : > { %1518 = vmatprep.mubr.bf16.mxu0 %v1751_v24  ;;  %1526 = vmatprep.mubr.bf16.mxu1 %v1752_v25 }
 0x1b7   : > { %1519 = vmatmul.mubr.bf16.gmra.mrb[12].mxu0 %v1751_v24  ;;  %1527 = vmatmul.mubr.bf16.gmra.mrb[12].mxu1 %v1752_v25 }
 0x272   : > { %v638_v26 = vpop.f32.mrb[0].mxu0  ;;  %v678_v27 = vpop.f32.mrb[0].mxu1 }
 0x273   : > { %v717_v28 = vmul.f32 20.0, %v638_v26  ;;  %v733_v29 = vmul.f32 20.0, %v678_v27  ;;  %v640_v30 = vpop.f32.mrb[1].mxu0  ;;  %v680_v31 = vpop.f32.mrb[1].mxu1 }
 0x274   : > { %v718_v32 = vmul.f32 20.0, %v640_v30  ;;  %v734_v33 = vmul.f32 20.0, %v680_v31  ;;  %v642_v34 = vpop.f32.mrb[2].mxu0  ;;  %v682_v35 = vpop.f32.mrb[2].mxu1 }
 0x275   : > { %v749_v36 = vmul.f32 1.442695, %v717_v28  ;;  %v781_v37 = vmul.f32 1.442695, %v733_v29  ;;  %v719_v38 = vmul.f32 20.0, %v642_v34  ;;  %v735_v39 = vmul.f32 20.0, %v682_v35 }
 0x276   : > { %v751_v40 = vmul.f32 1.442695, %v718_v32  ;;  %v783_v41 = vmul.f32 1.442695, %v734_v33  ;;  %v644_v42 = vpop.f32.mrb[3].mxu0  ;;  %v684_v43 = vpop.f32.mrb[3].mxu1 }
 0x277   : > { %1753 = vpow2.f32 %v749_v36  ;;  %v753_v44 = vmul.f32 1.442695, %v719_v38  ;;  %v720_v45 = vmul.f32 20.0, %v644_v42  ;;  %v785_v46 = vmul.f32 1.442695, %v735_v39 }
 0x278   : > { %1755 = vpow2.f32 %v781_v37  ;;  %v736_v47 = vmul.f32 20.0, %v684_v43 }
 0x279   : > { %1757 = vpow2.f32 %v751_v40  ;;  %v755_v48 = vmul.f32 1.442695, %v720_v45 }
 0x27a   : > { %1759 = vpow2.f32 %v783_v41  ;;  %v787_v49 = vmul.f32 1.442695, %v736_v47  ;;  %v648_v50 = vpop.f32.mrb[4].mxu0  ;;  %v688_v51 = vpop.f32.mrb[4].mxu1 }
 0x27b   : > { %1761 = vpow2.f32 %v753_v44  ;;  %v721_v52 = vmul.f32 20.0, %v648_v50  ;;  %v737_v53 = vmul.f32 20.0, %v688_v51  ;;  %v650_v54 = vpop.f32.mrb[5].mxu0  ;;  %v690_v55 = vpop.f32.mrb[5].mxu1 }
 0x27c   : > { %1763 = vpow2.f32 %v785_v46  ;;  %v722_v56 = vmul.f32 20.0, %v650_v54  ;;  %v738_v57 = vmul.f32 20.0, %v690_v55  ;;  %v652_v58 = vpop.f32.mrb[6].mxu0  ;;  %v692_v59 = vpop.f32.mrb[6].mxu1 }
 0x27d   : > { %1765 = vpow2.f32 %v755_v48  ;;  %v757_v60 = vmul.f32 1.442695, %v721_v52  ;;  %v789_v61 = vmul.f32 1.442695, %v737_v53  ;;  %v723_v62 = vmul.f32 20.0, %v652_v58  ;;  %v654_v63 = vpop.f32.mrb[7].mxu0 }
 0x27e   : > { %1767 = vpow2.f32 %v787_v49  ;;  %v759_v0 = vmul.f32 1.442695, %v722_v56  ;;  %v791_v1 = vmul.f32 1.442695, %v738_v57  ;;  %v739_v9 = vmul.f32 20.0, %v692_v59  ;;  %v694_v10 = vpop.f32.mrb[7].mxu1 }
 0x27f   : > { %1769 = vpow2.f32 %v757_v60  ;;  %v761_v20 = vmul.f32 1.442695, %v723_v62  ;;  %v724_v21 = vmul.f32 20.0, %v654_v63  ;;  %v740_v22 = vmul.f32 20.0, %v694_v10 }
 0x280   : > { %1771 = vpow2.f32 %v789_v61  ;;  %v793_v23 = vmul.f32 1.442695, %v739_v9 }
 0x281   : > { %v2578_v24 = vpop.eup %1753  ;;  %1773 = vpow2.f32 %v759_v0  ;;  %v763_v25 = vmul.f32 1.442695, %v724_v21  ;;  %v795_v27 = vmul.f32 1.442695, %v740_v22 }
 0x282   : > { %v2580_v26 = vpop.eup %1755  ;;  %1775 = vpow2.f32 %v791_v1  ;;  %v658_v28 = vpop.f32.mrb[8].mxu0 }
 0x283   : > { %v698_v29 = vpop.f32.mrb[8].mxu1  ;;  %v2582_v30 = vpop.eup %1757  ;;  %1777 = vpow2.f32 %v761_v20  ;;  %v725_v31 = vmul.f32 20.0, %v658_v28 }
 0x284   : > { %v741_v32 = vmul.f32 20.0, %v698_v29  ;;  %v660_v33 = vpop.f32.mrb[9].mxu0  ;;  %v700_v34 = vpop.f32.mrb[9].mxu1  ;;  %1779 = vpow2.f32 %v793_v23 }
 0x285   : > { %v2584_v35 = vpop.eup %1759  ;;  %v726_v36 = vmul.f32 20.0, %v660_v33  ;;  %v742_v37 = vmul.f32 20.0, %v700_v34  ;;  %v662_v38 = vpop.f32.mrb[10].mxu0  ;;  %1781 = vpow2.f32 %v763_v25  ;;  %v765_v41 = vmul.f32 1.442695, %v725_v31 }
 0x286   : > { %v702_v39 = vpop.f32.mrb[10].mxu1  ;;  %v2586_v40 = vpop.eup %1761  ;;  %v797_v42 = vmul.f32 1.442695, %v741_v32  ;;  %v727_v43 = vmul.f32 20.0, %v662_v38  ;;  %1783 = vpow2.f32 %v795_v27 }
 0x287   : > { %v664_v44 = vpop.f32.mrb[11].mxu0  ;;  %v2588_v45 = vpop.eup %1763  ;;  %v767_v46 = vmul.f32 1.442695, %v726_v36  ;;  %v799_v47 = vmul.f32 1.442695, %v742_v37  ;;  %v743_v48 = vmul.f32 20.0, %v702_v39  ;;  %1785 = vpow2.f32 %v765_v41 }
 0x288   : > { %v704_v49 = vpop.f32.mrb[11].mxu1  ;;  %v2590_v50 = vpop.eup %1765  ;;  %v769_v51 = vmul.f32 1.442695, %v727_v43  ;;  %v728_v52 = vmul.f32 20.0, %v664_v44  ;;  %1787 = vpow2.f32 %v797_v42 }
 0x289   : > { %v744_v53 = vmul.f32 20.0, %v704_v49  ;;  %v2592_v54 = vpop.eup %1767  ;;  %v801_v55 = vmul.f32 1.442695, %v743_v48  ;;  %1789 = vpow2.f32 %v767_v46 }
 0x28a   : > { %v2594_v56 = vpop.eup %1769  ;;  %v771_v57 = vmul.f32 1.442695, %v728_v52  ;;  %1791 = vpow2.f32 %v799_v47  ;;  %v668_v60 = vpop.f32.mrb[12].mxu0 }
 0x28b   : > { %v2596_v58 = vpop.eup %1771  ;;  %v803_v59 = vmul.f32 1.442695, %v744_v53  ;;  %v708_v61 = vpop.f32.mrb[12].mxu1  ;;  %1793 = vpow2.f32 %v769_v51  ;;  %v729_v63 = vmul.f32 20.0, %v668_v60 }
 0x28c   : > { %v2598_v62 = vpop.eup %1773  ;;  %v745_v0 = vmul.f32 20.0, %v708_v61  ;;  %v670_v1 = vpop.f32.mrb[13].mxu0  ;;  %1795 = vpow2.f32 %v801_v55 }
 0x28d   : > { %v710_v9 = vpop.f32.mrb[13].mxu1  ;;  %v2600_v10 = vpop.eup %1775  ;;  %v730_v20 = vmul.f32 20.0, %v670_v1  ;;  %1797 = vpow2.f32 %v771_v57  ;;  %v773_v27 = vmul.f32 1.442695, %v729_v63 }
 0x28e   : > { %v746_v21 = vmul.f32 20.0, %v710_v9  ;;  %v672_v22 = vpop.f32.mrb[14].mxu0  ;;  %v712_v23 = vpop.f32.mrb[14].mxu1  ;;  %v805_v28 = vmul.f32 1.442695, %v745_v0  ;;  %1799 = vpow2.f32 %v803_v59 }
 0x28f   : > { %v2602_v25 = vpop.eup %1777  ;;  %v731_v29 = vmul.f32 20.0, %v672_v22  ;;  %v674_v31 = vpop.f32.mrb[15].mxu0  ;;  %v775_v33 = vmul.f32 1.442695, %v730_v20  ;;  %v747_v36 = vmul.f32 20.0, %v712_v23  ;;  %1801 = vpow2.f32 %v773_v27 }
 0x290   : > { %v2604_v32 = vpop.eup %1779  ;;  %v807_v34 = vmul.f32 1.442695, %v746_v21  ;;  %v714_v37 = vpop.f32.mrb[15].mxu1  ;;  %v732_v41 = vmul.f32 20.0, %v674_v31  ;;  %1803 = vpow2.f32 %v805_v28  ;;  %v823_v22 = vlaneseq (!%p819_p3) }
 0x291   : > { %v2606_v38 = vpop.eup %1781  ;;  %v777_v39 = vmul.f32 1.442695, %v731_v29  ;;  %v748_v42 = vmul.f32 20.0, %v714_v37  ;;  %v809_v44 = vmul.f32 1.442695, %v747_v36  ;;  %1805 = vpow2.f32 %v775_v33 }
 0x292   : > { %v2608_v43 = vpop.eup %1783  ;;  %v779_v47 = vmul.f32 1.442695, %v732_v41  ;;  %1807 = vpow2.f32 %v807_v34  ;;  %v2648_v23 = vstv (!%p819_p3), %s2557_s11  ;;  %v860_v27 = vstv (!%p819_p3), %s2560_s8 }
 0x293   : > { %v2610_v46 = vpop.eup %1785  ;;  %v811_v49 = vmul.f32 1.442695, %v748_v42  ;;  %1809 = vpow2.f32 %v777_v39  ;;  %v2651_v28 = vshrl.u32 (!%p819_p3), %v823_v22, 7  ;;  %v858_v29 = vand.u32 (!%p819_p3), 127, %v823_v22 }
 0x294   : > { %v2612_v48 = vpop.eup %1787  ;;  %1811 = vpow2.f32 %v809_v44 }
 0x295   : > { %v2614_v51 = vpop.eup %1789  ;;  %1813 = vpow2.f32 %v779_v47  ;;  %v832_v31 = vadd.s32 (!%p819_p3), 64, %v2651_v28  ;;  %v841_v33 = vadd.s32 (!%p819_p3), %v2648_v23, %v2651_v28  ;;  %v859_v34 = vadd.s32 (!%p819_p3), 128, %v858_v29 }
 0x296   : > { %v2616_v52 = vpop.eup %1791  ;;  %1815 = vpow2.f32 %v811_v49  ;;  %v2656_v36 = vadd.s32 (!%p819_p3), %v860_v27, %v858_v29  ;;  %v825_v37 = vadd.s32 (!%p819_p3), 8, %v2651_v28  ;;  %v833_v39 = vadd.s32 (!%p819_p3), 72, %v2651_v28 }
 0x297   : > { %v2618_v53 = vpop.eup %1793  ;;  %v826_v41 = vadd.s32 (!%p819_p3), 16, %v2651_v28  ;;  %v834_v42 = vadd.s32 (!%p819_p3), 80, %v2651_v28  ;;  %v849_v44 = vadd.s32 (!%p819_p3), %v2648_v23, %v832_v31  ;;  %v2663_v47 = vadd.s32 (!%p819_p3), %v860_v27, %v859_v34 }
 0x298   : > { %v2620_v55 = vpop.eup %1795  ;;  %vm863_vm0 = vcmp.eq.s32.totalorder (!%p819_p3), %v841_v33, %v2656_v36  ;;  %v827_v49 = vadd.s32 (!%p819_p3), 24, %v2651_v28  ;;  %v842_v29 = vadd.s32 (!%p819_p3), %v2648_v23, %v825_v37  ;;  %v850_v19 = vadd.s32 (!%p819_p3), %v2648_v23, %v833_v39 }
 0x299   : > { %v2622_v57 = vpop.eup %1797  ;;  %v895_v22 = vsel (!%p819_p3), %vm863_vm0, 0.0, %v2578_v24  ;;  %v843_v18 = vadd.s32 (!%p819_p3), %v2648_v23, %v826_v41  ;;  %vm864_vm1 = vcmp.eq.s32.totalorder (!%p819_p3), %v841_v33, %v2663_v47  ;;  %vm879_vm2 = vcmp.eq.s32.totalorder (!%p819_p3), %v849_v44, %v2656_v36  ;;  %v951_v33 = vld [vmem:[%s2427_s30] sm:$0xff] (!%p819_p3) }
 0x29a   : > { %v2624_v59 = vpop.eup %1799  ;;  %vm880_vm3 = vcmp.eq.s32.totalorder (!%p819_p3), %v849_v44, %v2663_v47  ;;  %v851_v27 = vadd.s32 (!%p819_p3), %v2648_v23, %v834_v42  ;;  %v896_v31 = vsel (!%p819_p3), %vm864_vm1, 0.0, %v2582_v30  ;;  %v911_v34 = vsel (!%p819_p3), %vm879_vm2, 0.0, %v2580_v26 }
 0x29b   : > { %v2626_v60 = vpop.eup %1801  ;;  %v912_v17 = vsel (!%p819_p3), %vm880_vm3, 0.0, %v2584_v35  ;;  %vm865_vm4 = vcmp.eq.s32.totalorder (!%p819_p3), %v842_v29, %v2656_v36  ;;  %v927_v37 = vadd.f32 (!%p819_p3), %v896_v31, %v895_v22  ;;  %vm866_vm5 = vcmp.eq.s32.totalorder (!%p819_p3), %v842_v29, %v2663_v47  ;;  %v952_v29 = vld [vmem:[%s2427_s30 + $0x8] sm:$0xff] (!%p819_p3) }
 0x29c   : > { %v2628_v61 = vpop.eup %1803  ;;  %822 = sbr.rel (%p819_p3) target bundleno = 701 (0x2bd), region = 60  ;;  %v935_v39 = vadd.f32 (!%p819_p3), %v912_v17, %v911_v34  ;;  %vm881_vm6 = vcmp.eq.s32.totalorder (!%p819_p3), %v850_v19, %v2656_v36  ;;  %vm882_vm7 = vcmp.eq.s32.totalorder (!%p819_p3), %v850_v19, %v2663_v47  ;;  %v897_v41 = vsel (!%p819_p3), %vm865_vm4, 0.0, %v2586_v40 }
 0x29d   : > { %v2630_v63 = vpop.eup %1805  ;;  %v898_v42 = vsel (!%p819_p3), %vm866_vm5, 0.0, %v2590_v50  ;;  %v913_v44 = vsel (!%p819_p3), %vm881_vm6, 0.0, %v2588_v45  ;;  %v914_v15 = vsel (!%p819_p3), %vm882_vm7, 0.0, %v2592_v54  ;;  %vm867_vm8 = vcmp.eq.s32.totalorder (!%p819_p3), %v843_v18, %v2656_v36 }
 0x29e   : > { %v2632_v0 = vpop.eup %1807  ;;  %v943_v16 = vadd.f32 (!%p819_p3), %v935_v39, %v927_v37  ;;  %v928_v22 = vadd.f32 (!%p819_p3), %v898_v42, %v897_v41  ;;  %v936_v17 = vadd.f32 (!%p819_p3), %v914_v15, %v913_v44  ;;  %vm868_vm9 = vcmp.eq.s32.totalorder (!%p819_p3), %v843_v18, %v2663_v47 }
 0x29f   : > { %v2634_v1 = vpop.eup %1809  ;;  %vm883_vm10 = vcmp.eq.s32.totalorder (!%p819_p3), %v851_v27, %v2656_v36  ;;  %vm884_vm11 = vcmp.eq.s32.totalorder (!%p819_p3), %v851_v27, %v2663_v47  ;;  %v899_v31 = vsel (!%p819_p3), %vm867_vm8, 0.0, %v2594_v56  ;;  %v900_v34 = vsel (!%p819_p3), %vm868_vm9, 0.0, %v2598_v62 }
 0x2a0   : > { %v2636_v9 = vpop.eup %1811  ;;  %v959_v19 = vadd.f32 (!%p819_p3), %v951_v33, %v943_v16  ;;  %v915_v37 = vsel (!%p819_p3), %vm883_vm10, 0.0, %v2596_v58  ;;  %v944_v39 = vadd.f32 (!%p819_p3), %v936_v17, %v928_v22  ;;  %v916_v41 = vsel (!%p819_p3), %vm884_vm11, 0.0, %v2600_v10 }
 0x2a1   : > { %v2638_v20 = vpop.eup %1813  ;;  %v929_v42 = vadd.f32 (!%p819_p3), %v900_v34, %v899_v31  ;;  %v835_v15 = vadd.s32 (!%p819_p3), 88, %v2651_v28  ;;  %v937_v18 = vadd.f32 (!%p819_p3), %v916_v41, %v915_v37  ;;  %v844_v27 = vadd.s32 (!%p819_p3), %v2648_v23, %v827_v49 }
 0x2a2   : > { %v2640_v21 = vpop.eup %1815  ;;  %967 = vst [vmem:[%s2427_s30] sm:$0xff] (!%p819_p3), %v959_v19  ;;  %v828_v16 = vadd.s32 (!%p819_p3), 32, %v2651_v28  ;;  %v836_v33 = vadd.s32 (!%p819_p3), 96, %v2651_v28  ;;  %v960_v44 = vadd.f32 (!%p819_p3), %v952_v29, %v944_v39  ;;  %v829_v22 = vadd.s32 (!%p819_p3), 40, %v2651_v28 }
 0x2a3   : > { %v852_v13 = vadd.s32 %v2648_v23, %v835_v15  ;;  %v837_v17 = vadd.s32 104, %v2651_v28  ;;  %v945_v31 = vadd.f32 %v937_v18, %v929_v42  ;;  %vm869_vm12 = vcmp.eq.s32.totalorder %v844_v27, %v2656_v36  ;;  %v954_v18 = vld [vmem:[%s2427_s30 + $0x18] sm:$0xff] }
 0x2a4   : > { %vm870_vm13 = vcmp.eq.s32.totalorder %v844_v27, %v2663_v47  ;;  %v845_v49 = vadd.s32 %v2648_v23, %v828_v16  ;;  %968 = vst [vmem:[%s2427_s30 + $0x8] sm:$0xff] %v960_v44  ;;  %v901_v19 = vsel %vm869_vm12, 0.0, %v2602_v25  ;;  %v853_v15 = vadd.s32 %v2648_v23, %v836_v33 }
 0x2a5   : > { %vm885_vm14 = vcmp.eq.s32.totalorder %v852_v13, %v2656_v36  ;;  %vm886_vm15 = vcmp.eq.s32.totalorder %v852_v13, %v2663_v47  ;;  %v902_v29 = vsel %vm870_vm13, 0.0, %v2606_v38  ;;  %v961_v34 = vadd.f32 %v953_v14, %v945_v31 }
 0x2a6   : > { %v917_v37 = vsel %vm885_vm14, 0.0, %v2604_v32  ;;  %v918_v39 = vsel %vm886_vm15, 0.0, %v2608_v43  ;;  %v930_v41 = vadd.f32 %v902_v29, %v901_v19  ;;  %vm871_vm0 = vcmp.eq.s32.totalorder %v845_v49, %v2656_v36 }
 0x2a7   : > { %v938_v42 = vadd.f32 %v918_v39, %v917_v37  ;;  %vm872_vm1 = vcmp.eq.s32.totalorder %v845_v49, %v2663_v47  ;;  %969 = vst [vmem:[%s2427_s30 + $0x10] sm:$0xff] %v961_v34  ;;  %v903_v13 = vsel %vm871_vm0, 0.0, %v2610_v46  ;;  %v846_v14 = vadd.s32 %v2648_v23, %v829_v22 }
 0x2a8   : > { %v904_v27 = vsel %vm872_vm1, 0.0, %v2614_v51  ;;  %v854_v16 = vadd.s32 %v2648_v23, %v837_v17  ;;  %vm887_vm2 = vcmp.eq.s32.totalorder %v853_v15, %v2656_v36  ;;  %vm888_vm3 = vcmp.eq.s32.totalorder %v853_v15, %v2663_v47  ;;  %v955_v17 = vld [vmem:[%s2427_s30 + $0x20] sm:$0xff] }
 0x2a9   : > { %v946_v44 = vadd.f32 %v938_v42, %v930_v41  ;;  %v931_v33 = vadd.f32 %v904_v27, %v903_v13  ;;  %v919_v31 = vsel %vm887_vm2, 0.0, %v2612_v48  ;;  %v920_v49 = vsel %vm888_vm3, 0.0, %v2616_v52  ;;  %v956_v13 = vld [vmem:[%s2427_s30 + $0x28] sm:$0xff] }
 0x2aa   : > { %vm873_vm4 = vcmp.eq.s32.totalorder %v846_v14, %v2656_v36  ;;  %vm874_vm5 = vcmp.eq.s32.totalorder %v846_v14, %v2663_v47  ;;  %v939_v22 = vadd.f32 %v920_v49, %v919_v31  ;;  %vm889_vm6 = vcmp.eq.s32.totalorder %v854_v16, %v2656_v36 }
 0x2ab   : > { %v962_v19 = vadd.f32 %v954_v18, %v946_v44  ;;  %vm890_vm7 = vcmp.eq.s32.totalorder %v854_v16, %v2663_v47  ;;  %v905_v29 = vsel %vm873_vm4, 0.0, %v2618_v53  ;;  %v906_v34 = vsel %vm874_vm5, 0.0, %v2622_v57 }
 0x2ac   : > { %v921_v37 = vsel %vm889_vm6, 0.0, %v2620_v55  ;;  %v922_v39 = vsel %vm890_vm7, 0.0, %v2624_v59  ;;  %v947_v41 = vadd.f32 %v939_v22, %v931_v33  ;;  %v932_v42 = vadd.f32 %v906_v34, %v905_v29 }
 0x2ad   : > { %970 = vst [vmem:[%s2427_s30 + $0x18] sm:$0xff] %v962_v19  ;;  %v940_v15 = vadd.f32 %v922_v39, %v921_v37  ;;  %v830_v18 = vadd.s32 48, %v2651_v28  ;;  %v838_v27 = vadd.s32 112, %v2651_v28  ;;  %v831_v14 = vadd.s32 56, %v2651_v28 }
 0x2ae   : > { %v839_v16 = vadd.s32 120, %v2651_v28  ;;  %v963_v44 = vadd.f32 %v955_v17, %v947_v41 }
 0x2af   : > { %v948_v31 = vadd.f32 %v940_v15, %v932_v42  ;;  %v847_v49 = vadd.s32 %v2648_v23, %v830_v18  ;;  %v855_v12 = vadd.s32 %v2648_v23, %v838_v27  ;;  %v848_v33 = vadd.s32 %v2648_v23, %v831_v14  ;;  %v958_v14 = vld [vmem:[%s2427_s30 + $0x38] sm:$0xff] }
 0x2b0   : > { %v856_v19 = vadd.s32 %v2648_v23, %v839_v16  ;;  %971 = vst [vmem:[%s2427_s30 + $0x20] sm:$0xff] %v963_v44 }
 0x2b1   : > { %v964_v22 = vadd.f32 %v956_v13, %v948_v31  ;;  %vm875_vm8 = vcmp.eq.s32.totalorder %v847_v49, %v2656_v36  ;;  %vm876_vm9 = vcmp.eq.s32.totalorder %v847_v49, %v2663_v47  ;;  %vm891_vm10 = vcmp.eq.s32.totalorder %v855_v12, %v2656_v36 }
 0x2b2   : > { %vm892_vm11 = vcmp.eq.s32.totalorder %v855_v12, %v2663_v47  ;;  %v907_v28 = vsel %vm875_vm8, 0.0, %v2626_v60  ;;  %v908_v17 = vsel %vm876_vm9, 0.0, %v2630_v63  ;;  %v923_v29 = vsel %vm891_vm10, 0.0, %v2628_v61  ;;  %v957_v12 = vld [vmem:[%s2427_s30 + $0x30] sm:$0xff] }
 0x2b3   : > { %972 = vst [vmem:[%s2427_s30 + $0x28] sm:$0xff] %v964_v22  ;;  %v924_v23 = vsel %vm892_vm11, 0.0, %v2632_v0  ;;  %v933_v34 = vadd.f32 %v908_v17, %v907_v28  ;;  %vm877_vm12 = vcmp.eq.s32.totalorder %v848_v33, %v2656_v36  ;;  %vm878_vm13 = vcmp.eq.s32.totalorder %v848_v33, %v2663_v47 }
 0x2b4   : > { %v941_v37 = vadd.f32 %v924_v23, %v923_v29  ;;  %vm893_vm14 = vcmp.eq.s32.totalorder %v856_v19, %v2656_v36  ;;  %vm894_vm15 = vcmp.eq.s32.totalorder %v856_v19, %v2663_v47  ;;  %v909_v39 = vsel %vm877_vm12, 0.0, %v2634_v1 }
 0x2b5   : > { %v910_v41 = vsel %vm878_vm13, 0.0, %v2638_v20  ;;  %v925_v42 = vsel %vm893_vm14, 0.0, %v2636_v9  ;;  %v926_v15 = vsel %vm894_vm15, 0.0, %v2640_v21 }
 0x2b6   : > { %v949_v18 = vadd.f32 %v941_v37, %v933_v34  ;;  %v934_v13 = vadd.f32 %v910_v41, %v909_v39  ;;  %v942_v27 = vadd.f32 %v926_v15, %v925_v42 }
 0x2b8   : > { %v965_v16 = vadd.f32 %v957_v12, %v949_v18  ;;  %v950_v44 = vadd.f32 %v942_v27, %v934_v13 }
 0x2ba   : > { %973 = vst [vmem:[%s2427_s30 + $0x30] sm:$0xff] %v965_v16  ;;  %v966_v31 = vadd.f32 %v958_v14, %v950_v44 }
 0x2bc   : > { %974 = vst [vmem:[%s2427_s30 + $0x38] sm:$0xff] %v966_v31 }
 0x2bd PF: > { %977 = sbr.rel (!%p819_p3) target bundleno = 714 (0x2ca), region = 64  ;;  %v978_v36 = vadd.f32 (%p819_p3), %v2582_v30, %v2578_v24  ;;  %v986_v47 = vadd.f32 (%p819_p3), %v2584_v35, %v2580_v26  ;;  %v979_v49 = vadd.f32 (%p819_p3), %v2590_v50, %v2586_v40  ;;  %v987_v33 = vadd.f32 (%p819_p3), %v2592_v54, %v2588_v45  ;;  %v1003_v22 = vld [vmem:[%s2427_s30 + $0x8] sm:$0xff] (%p819_p3)  ;;  %v1004_v40 = vld [vmem:[%s2427_s30 + $0x10] sm:$0xff] (%p819_p3)  ;;  %v1005_v50 = vld [vmem:[%s2427_s30 + $0x18] sm:$0xff] (%p819_p3) }
 0x2be   : > { %v980_v28 = vadd.f32 (%p819_p3), %v2598_v62, %v2594_v56  ;;  %v988_v17 = vadd.f32 (%p819_p3), %v2600_v10, %v2596_v58  ;;  %v981_v24 = vadd.f32 (%p819_p3), %v2606_v38, %v2602_v25  ;;  %v989_v26 = vadd.f32 (%p819_p3), %v2608_v43, %v2604_v32  ;;  %v1006_v62 = vld [vmem:[%s2427_s30 + $0x20] sm:$0xff] (%p819_p3) }
 0x2bf   : > { %v994_v30 = vadd.f32 (%p819_p3), %v986_v47, %v978_v36  ;;  %v995_v35 = vadd.f32 (%p819_p3), %v987_v33, %v979_v49  ;;  %v982_v45 = vadd.f32 (%p819_p3), %v2614_v51, %v2610_v46  ;;  %v990_v54 = vadd.f32 (%p819_p3), %v2616_v52, %v2612_v48  ;;  %v1007_v46 = vld [vmem:[%s2427_s30 + $0x28] sm:$0xff] (%p819_p3) }
 0x2c0   : > { %v996_v56 = vadd.f32 (%p819_p3), %v988_v17, %v980_v28  ;;  %v997_v58 = vadd.f32 (%p819_p3), %v989_v26, %v981_v24  ;;  %v983_v10 = vadd.f32 (%p819_p3), %v2622_v57, %v2618_v53  ;;  %v991_v25 = vadd.f32 (%p819_p3), %v2624_v59, %v2620_v55 }
 0x2c1   : > { %v1011_v38 = vadd.f32 (%p819_p3), %v1003_v22, %v995_v35  ;;  %v998_v43 = vadd.f32 (%p819_p3), %v990_v54, %v982_v45  ;;  %v984_v48 = vadd.f32 (%p819_p3), %v2630_v63, %v2626_v60  ;;  %v992_v53 = vadd.f32 (%p819_p3), %v2632_v0, %v2628_v61  ;;  %v1008_v57 = vld [vmem:[%s2427_s30 + $0x30] sm:$0xff] (%p819_p3) }
 0x2c2   : > { %v1012_v51 = vadd.f32 (%p819_p3), %v1004_v40, %v996_v56  ;;  %v1013_v52 = vadd.f32 (%p819_p3), %v1005_v50, %v997_v58  ;;  %v999_v29 = vadd.f32 (%p819_p3), %v991_v25, %v983_v10  ;;  %v985_v59 = vadd.f32 (%p819_p3), %v2638_v20, %v2634_v1 }
 0x2c3   : > { %v1002_v19 = vld [vmem:[%s2427_s30] sm:$0xff] (%p819_p3)  ;;  %1019 = vst [vmem:[%s2427_s30 + $0x8] sm:$0xff] (%p819_p3), %v1011_v38  ;;  %v1014_v55 = vadd.f32 (%p819_p3), %v1006_v62, %v998_v43  ;;  %v993_v60 = vadd.f32 (%p819_p3), %v2640_v21, %v2636_v9  ;;  %v1000_v23 = vadd.f32 (%p819_p3), %v992_v53, %v984_v48  ;;  %v1009_v34 = vld [vmem:[%s2427_s30 + $0x38] sm:$0xff] (%p819_p3) }
 0x2c4   : > { %v1010_v32 = vadd.f32 %v1002_v19, %v994_v30  ;;  %1020 = vst [vmem:[%s2427_s30 + $0x10] sm:$0xff] %v1012_v51  ;;  %1021 = vst [vmem:[%s2427_s30 + $0x18] sm:$0xff] %v1013_v52  ;;  %v1015_v63 = vadd.f32 %v1007_v46, %v999_v29 }
 0x2c5   : > { %1022 = vst [vmem:[%s2427_s30 + $0x20] sm:$0xff] %v1014_v55  ;;  %v1001_v37 = vadd.f32 %v993_v60, %v985_v59  ;;  %v1016_v61 = vadd.f32 %v1008_v57, %v1000_v23 }
 0x2c6   : > { %1018 = vst [vmem:[%s2427_s30] sm:$0xff] %v1010_v32  ;;  %1023 = vst [vmem:[%s2427_s30 + $0x28] sm:$0xff] %v1015_v63 }
 0x2c7   : > { %v1017_v0 = vadd.f32 %v1009_v34, %v1001_v37  ;;  %1024 = vst [vmem:[%s2427_s30 + $0x30] sm:$0xff] %v1016_v61 }
 0x2c9   : > { %1025 = vst [vmem:[%s2427_s30 + $0x38] sm:$0xff] %v1017_v0 }
 0x2ca PF: > { %1028 = sbr.rel (%p399_p1) target bundleno = 1025 (0x401), region = 68  ;;  %1528 = vmatprep.subr.bf16.mxu0 (!%p399_p1), %v2469_v2  ;;  %1568 = vmatprep.subr.bf16.mxu1 (!%p399_p1), %v2469_v2  ;;  %v1817_v1 = vld [vmem:[#allocation2] sm:$0xff] (!%p399_p1)   ;;  %v1818_v9 = vld [vmem:[#allocation2 + $0x10] sm:$0xff] (!%p399_p1)   ;;  %v1819_v20 = vld [vmem:[#allocation2 + $0x8] sm:$0xff] (!%p399_p1)  }
 0x2cb   : > { %1529 = vmatpush3.bf16.xpose.msra.mxu0 (!%p399_p1), %v2472_v3  ;;  %1576 = vmatpush3.bf16.xpose.msra.mxu1 (!%p399_p1), %v2472_v3  ;;  %v3064_v2 = vld [vmem:[#allocation20_spill] sm:$0xff] (!%p399_p1)  ;;  %v3065_v3 = vld [vmem:[#allocation21_spill] sm:$0xff] (!%p399_p1)  ;;  %v1820_v21 = vld [vmem:[#allocation2 + $0x18] sm:$0xff] (!%p399_p1)  }
 0x2cc   : > { %1530 = vmatprep.subr.bf16.mxu0 (!%p399_p1), %v2477_v4  ;;  %1569 = vmatprep.subr.bf16.mxu1 (!%p399_p1), %v2477_v4  ;;  %v3066_v4 = vld [vmem:[#allocation22_spill] sm:$0xff] (!%p399_p1) }
 0x2cd   : > { %1544 = vmatprep.mubr.bf16.mxu0 (!%p399_p1), %v1817_v1  ;;  %1548 = vmatprep.mubr.bf16.mxu1 (!%p399_p1), %v1818_v9  ;;  %v1190_v0 = vld [vmem:[%s2427_s30] sm:$0xff] (!%p399_p1) }
 0x2d3   : > { %1531 = vmatpush3.bf16.xpose.msra.mxu0 %v2484_v5  ;;  %1577 = vmatpush3.bf16.xpose.msra.mxu1 %v2484_v5  ;;  %v3067_v5 = vld [vmem:[#allocation23_spill] sm:$0xff] }
 0x2d4   : > { %1532 = vmatprep.subr.bf16.mxu0 %v2487_v6  ;;  %1570 = vmatprep.subr.bf16.mxu1 %v2487_v6  ;;  %v3068_v6 = vld [vmem:[#allocation24_spill] sm:$0xff] }
 0x2db   : > { %1533 = vmatpush3.bf16.xpose.msra.mxu0 %v2494_v7  ;;  %1578 = vmatpush3.bf16.xpose.msra.mxu1 %v2494_v7  ;;  %v3069_v7 = vld [vmem:[#allocation25_spill] sm:$0xff] }
 0x2dc   : > { %1534 = vmatprep.subr.bf16.mxu0 %v2497_v8  ;;  %1571 = vmatprep.subr.bf16.mxu1 %v2497_v8  ;;  %v3070_v8 = vld [vmem:[#allocation26_spill] sm:$0xff] }
 0x2e3   : > { %1535 = vmatpush3.bf16.xpose.msra.mxu0 %v2506_v11  ;;  %1579 = vmatpush3.bf16.xpose.msra.mxu1 %v2506_v11  ;;  %v3071_v11 = vld [vmem:[#allocation27_spill] sm:$0xff] }
 0x2e4   : > { %1536 = vmatprep.subr.bf16.mxu0 %v3064_v2  ;;  %1572 = vmatprep.subr.bf16.mxu1 %v3064_v2  ;;  %v1194_v2 = vld [vmem:[%s2427_s30 + $0x20] sm:$0xff] }
 0x2eb   : > { %1537 = vmatpush3.bf16.xpose.msra.mxu0 %v3065_v3  ;;  %1580 = vmatpush3.bf16.xpose.msra.mxu1 %v3065_v3 }
 0x2ec   : > { %1538 = vmatprep.subr.bf16.mxu0 %v3066_v4  ;;  %1573 = vmatprep.subr.bf16.mxu1 %v3066_v4 }
 0x2f3   : > { %1539 = vmatpush3.bf16.xpose.msra.mxu0 %v3067_v5  ;;  %1581 = vmatpush3.bf16.xpose.msra.mxu1 %v3067_v5 }
 0x2f4   : > { %1540 = vmatprep.subr.bf16.mxu0 %v3068_v6  ;;  %1574 = vmatprep.subr.bf16.mxu1 %v3068_v6 }
 0x2fb   : > { %1541 = vmatpush3.bf16.xpose.msra.mxu0 %v3069_v7  ;;  %1582 = vmatpush3.bf16.xpose.msra.mxu1 %v3069_v7 }
 0x2fc   : > { %1542 = vmatprep.subr.bf16.mxu0 %v3070_v8  ;;  %1575 = vmatprep.subr.bf16.mxu1 %v3070_v8 }
 0x303   : > { %1543 = vmatpush3.bf16.xpose.msra.mxu0 %v3071_v11  ;;  %1583 = vmatpush3.bf16.xpose.msra.mxu1 %v3071_v11  ;;  %v1191_v11 = vld [vmem:[%s2427_s30 + $0x8] sm:$0xff] }
 0x30a   : > { %1545 = vmatmul.mubr.bf16.vlgmr.msra.gmra.mrb[0].mxu0 %v1817_v1  ;;  %1549 = vmatmul.mubr.bf16.vlgmr.msra.gmra.mrb[0].mxu1 %v1818_v9 }
 0x30b   : > { %1546 = vmatprep.mubr.bf16.mxu0 %v1819_v20  ;;  %1550 = vmatprep.mubr.bf16.mxu1 %v1820_v21 }
 0x312   : > { %1547 = vmatmul.mubr.bf16.gmra.mrb[4].mxu0 %v1819_v20  ;;  %1551 = vmatmul.mubr.bf16.gmra.mrb[4].mxu1 %v1820_v21 }
 0x3dd   : > { %v1095_v12 = vpop.f32.mrb[0].mxu0  ;;  %v1115_v39 = vpop.f32.mrb[0].mxu1 }
 0x3de   : > { %v1134_v41 = vmul.f32 20.0, %v1095_v12  ;;  %v1142_v42 = vmul.f32 20.0, %v1115_v39  ;;  %v1097_v15 = vpop.f32.mrb[1].mxu0  ;;  %v1117_v18 = vpop.f32.mrb[1].mxu1  ;;  %v1195_v12 = vld [vmem:[%s2427_s30 + $0x28] sm:$0xff] }
 0x3df   : > { %v1135_v13 = vmul.f32 20.0, %v1097_v15  ;;  %v1143_v27 = vmul.f32 20.0, %v1117_v18  ;;  %v1099_v14 = vpop.f32.mrb[2].mxu0  ;;  %v1119_v16 = vpop.f32.mrb[2].mxu1 }
 0x3e0   : > { %v1150_v44 = vmul.f32 1.442695, %v1134_v41  ;;  %v1166_v31 = vmul.f32 1.442695, %v1142_v42  ;;  %v1136_v36 = vmul.f32 20.0, %v1099_v14  ;;  %v1144_v47 = vmul.f32 20.0, %v1119_v16 }
 0x3e1   : > { %v1152_v49 = vmul.f32 1.442695, %v1135_v13  ;;  %v1168_v33 = vmul.f32 1.442695, %v1143_v27  ;;  %v1101_v19 = vpop.f32.mrb[3].mxu0  ;;  %v1121_v22 = vpop.f32.mrb[3].mxu1 }
 0x3e2   : > { %1821 = vpow2.f32 %v1150_v44  ;;  %v1154_v28 = vmul.f32 1.442695, %v1136_v36  ;;  %v1137_v17 = vmul.f32 20.0, %v1101_v19  ;;  %v1170_v24 = vmul.f32 1.442695, %v1144_v47  ;;  %v1192_v27 = vld [vmem:[%s2427_s30 + $0x10] sm:$0xff] }
 0x3e3   : > { %1823 = vpow2.f32 %v1166_v31  ;;  %v1145_v26 = vmul.f32 20.0, %v1121_v22  ;;  %v1196_v44 = vld [vmem:[%s2427_s30 + $0x30] sm:$0xff]  ;;  %v1193_v22 = vld [vmem:[%s2427_s30 + $0x18] sm:$0xff] }
 0x3e4   : > { %1825 = vpow2.f32 %v1152_v49  ;;  %v1156_v30 = vmul.f32 1.442695, %v1137_v17 }
 0x3e5   : > { %1827 = vpow2.f32 %v1168_v33  ;;  %v1172_v35 = vmul.f32 1.442695, %v1145_v26  ;;  %v1105_v40 = vpop.f32.mrb[4].mxu0  ;;  %v1125_v50 = vpop.f32.mrb[4].mxu1 }
 0x3e6   : > { %1829 = vpow2.f32 %v1154_v28  ;;  %v1138_v45 = vmul.f32 20.0, %v1105_v40  ;;  %v1146_v54 = vmul.f32 20.0, %v1125_v50  ;;  %v1107_v56 = vpop.f32.mrb[5].mxu0  ;;  %v1127_v58 = vpop.f32.mrb[5].mxu1 }
 0x3e7   : > { %1831 = vpow2.f32 %v1170_v24  ;;  %v1139_v62 = vmul.f32 20.0, %v1107_v56  ;;  %v1147_v10 = vmul.f32 20.0, %v1127_v58  ;;  %v1109_v25 = vpop.f32.mrb[6].mxu0  ;;  %v1129_v32 = vpop.f32.mrb[6].mxu1  ;;  %v1197_v24 = vld [vmem:[%s2427_s30 + $0x38] sm:$0xff] }
 0x3e8   : > { %1833 = vpow2.f32 %v1156_v30  ;;  %v1158_v38 = vmul.f32 1.442695, %v1138_v45  ;;  %v1174_v43 = vmul.f32 1.442695, %v1146_v54  ;;  %v1140_v46 = vmul.f32 20.0, %v1109_v25  ;;  %v1111_v48 = vpop.f32.mrb[7].mxu0 }
 0x3e9   : > { %1835 = vpow2.f32 %v1172_v35  ;;  %v1160_v51 = vmul.f32 1.442695, %v1139_v62  ;;  %v1176_v52 = vmul.f32 1.442695, %v1147_v10  ;;  %v1148_v29 = vmul.f32 20.0, %v1129_v32  ;;  %v1131_v53 = vpop.f32.mrb[7].mxu1 }
 0x3ea   : > { %1837 = vpow2.f32 %v1158_v38  ;;  %v1162_v55 = vmul.f32 1.442695, %v1140_v46  ;;  %v1141_v57 = vmul.f32 20.0, %v1111_v48  ;;  %v1149_v59 = vmul.f32 20.0, %v1131_v53 }
 0x3eb   : > { %1839 = vpow2.f32 %v1174_v43  ;;  %v1178_v60 = vmul.f32 1.442695, %v1148_v29 }
 0x3ec   : > { %v1822_v63 = vpop.eup %1821  ;;  %1841 = vpow2.f32 %v1160_v51  ;;  %v1164_v23 = vmul.f32 1.442695, %v1141_v57  ;;  %v1180_v37 = vmul.f32 1.442695, %v1149_v59 }
 0x3ed   : > { %v1824_v34 = vpop.eup %1823  ;;  %1843 = vpow2.f32 %v1176_v52 }
 0x3ee   : > { %v1826_v61 = vpop.eup %1825  ;;  %1845 = vpow2.f32 %v1162_v55 }
 0x3ef   : > { %v1828_v1 = vpop.eup %1827  ;;  %v1182_v9 = vadd.f32 %v1826_v61, %v1822_v63  ;;  %1847 = vpow2.f32 %v1178_v60 }
 0x3f0   : > { %v1830_v3 = vpop.eup %1829  ;;  %v1186_v4 = vadd.f32 %v1828_v1, %v1824_v34  ;;  %1849 = vpow2.f32 %v1164_v23 }
 0x3f1   : > { %v1832_v5 = vpop.eup %1831  ;;  %v1198_v6 = vadd.f32 %v1190_v0, %v1182_v9  ;;  %1851 = vpow2.f32 %v1180_v37 }
 0x3f2   : > { %v1834_v7 = vpop.eup %1833  ;;  %v1202_v8 = vadd.f32 %v1194_v2, %v1186_v4 }
 0x3f3   : > { %v1836_v20 = vpop.eup %1835  ;;  %1206 = vst [vmem:[%s2427_s30] sm:$0xff] %v1198_v6  ;;  %v1183_v21 = vadd.f32 %v1834_v7, %v1830_v3 }
 0x3f4   : > { %v1838_v39 = vpop.eup %1837  ;;  %1210 = vst [vmem:[%s2427_s30 + $0x20] sm:$0xff] %v1202_v8  ;;  %v1187_v41 = vadd.f32 %v1836_v20, %v1832_v5 }
 0x3f5   : > { %v1840_v42 = vpop.eup %1839  ;;  %v1199_v15 = vadd.f32 %v1191_v11, %v1183_v21 }
 0x3f6   : > { %v1842_v18 = vpop.eup %1841  ;;  %v1203_v13 = vadd.f32 %v1195_v12, %v1187_v41 }
 0x3f7   : > { %v1844_v14 = vpop.eup %1843  ;;  %1207 = vst [vmem:[%s2427_s30 + $0x8] sm:$0xff] %v1199_v15  ;;  %v1184_v16 = vadd.f32 %v1842_v18, %v1838_v39 }
 0x3f8   : > { %v1846_v31 = vpop.eup %1845  ;;  %1211 = vst [vmem:[%s2427_s30 + $0x28] sm:$0xff] %v1203_v13  ;;  %v1188_v36 = vadd.f32 %v1844_v14, %v1840_v42 }
 0x3f9   : > { %v1848_v47 = vpop.eup %1847  ;;  %v1200_v49 = vadd.f32 %v1192_v27, %v1184_v16 }
 0x3fa   : > { %v1850_v33 = vpop.eup %1849  ;;  %v1204_v19 = vadd.f32 %v1196_v44, %v1188_v36 }
 0x3fb   : > { %v1852_v28 = vpop.eup %1851  ;;  %1208 = vst [vmem:[%s2427_s30 + $0x10] sm:$0xff] %v1200_v49  ;;  %v1185_v17 = vadd.f32 %v1850_v33, %v1846_v31 }
 0x3fc   : > { %1212 = vst [vmem:[%s2427_s30 + $0x30] sm:$0xff] %v1204_v19  ;;  %v1189_v26 = vadd.f32 %v1852_v28, %v1848_v47 }
 0x3fd   : > { %v1201_v30 = vadd.f32 %v1193_v22, %v1185_v17 }
 0x3fe   : > { %v1205_v35 = vadd.f32 %v1197_v24, %v1189_v26 }
 0x3ff   : > { %1209 = vst [vmem:[%s2427_s30 + $0x18] sm:$0xff] %v1201_v30 }
 0x400   : > { %1213 = vst [vmem:[%s2427_s30 + $0x38] sm:$0xff] %v1205_v35 }
 0x401 PF: > { %s1456_s21 = sshll.u32 %s2091_s22, 10  ;;  %s1233_s18 = sshll.u32 %s2427_s30, 4  ;;  %s2881_s18 = int_to_ptr.vmem [resolvable:$true] %s1233_s18 }
 0x402   : > { %s2878_s15 = scalar_lea.hbm %s2987_s3, %s1456_s21  ;;  %s1215_s7 = scalar_lea.sflag [#allocation4], %s2410_s14 }
 0x403   : > { %s1941_s0 = scalar_lea.vmem %s2881_s18, 1024  ;;  %p3072_p9 = scmp.ne.s32.totalorder %s3030_s10, 0 }
 0x404   : > { %p1942_p4 = scmp.ne.s32.totalorder %s2881_s18, %s1941_s0  ;;  %s2112_s12 = smov [#allocation8]  }
 0x405   : > { %s1945_s6 = sshll.u32 %s2112_s12, 4  ;;  %s1946_s6 = int_to_ptr.vmem [resolvable:$false] %s1945_s6 }
 0x406   : > { %p1943_p12 = pnand %p1942_p4, %p3072_p9  ;;  %s1947_s11 = scalar_lea.vmem %s1946_s6, 2048 }
 0x407   : > { %p1948_p13 = scmp.lt.s32.totalorder %s2881_s18, %s1946_s6  ;;  %p1949_p2 = scmp.lt.s32.totalorder %s1947_s11, %s1941_s0 }
 0x408   : > { %p1944_p6 = pneg %p1943_p12 }
 0x409   : > { %p1950_p5 = por %p1949_p2, %p1948_p13 }
 0x40b   : > { %p1951_p10 = pnand %p1950_p5, %p1944_p6 }
 0x40d   : > { %1954 = shalt.err (!%p1951_p10)
}
 0x40e   : > { %s1955_s30 = scalar_lea.hbm %s2878_s15, 1024  ;;  %s1959_s26 = scalar_lea.hbm %s2987_s3, 4096 }
 0x40f   : > { %p1956_p0 = scmp.ne.s32.totalorder %s2878_s15, %s1955_s30  ;;  %p1960_p7 = scmp.lt.u32.totalorder %s2878_s15, %s2987_s3 }
 0x410   : > { %p1961_p11 = scmp.lt.u32.totalorder %s1959_s26, %s1955_s30  ;;  %p1963_p4 = scmp.lt.u32.totalorder %s1955_s30, %s2878_s15 }
 0x411   : > { %p1957_p1 = pnand %p1956_p0, %p3072_p9 }
 0x412   : > { %p1962_p3 = por %p1961_p11, %p1960_p7 }
 0x413   : > { %p1958_p8 = pneg %p1957_p1 }
 0x414   : > { %p1964_p12 = por %p1963_p4, %p1962_p3 }
 0x416   : > { %p1965_p6 = pnand %p1964_p12, %p1958_p8 }
 0x418   : > { %1968 = shalt.err (!%p1965_p6)
}
 0x419   : > { %s2113_s4 = smov 128   ;;  %s2114_s9 = smov 8  }
 0x41a   : > { %1592 = dma.vmem_to_hbm [thread:$0]  (%p3072_p9), %s2881_s18, 1024, %s2878_s15, %s1215_s7, %s2113_s4, %s2113_s4, %s2114_s9  }
 0x41b   : > { %s3073_s6 = sld [smem:[#allocation30_spill]]  ;;  %s1249_s30 = sshll.u32 %s2429_s1, 4  ;;  %s2918_s30 = int_to_ptr.vmem [resolvable:$true] %s1249_s30 }
 0x41c   : > { %s1220_s8 = scalar_lea.sflag [#allocation10], %s2410_s14  ;;  %s1969_s13 = scalar_lea.vmem %s2918_s30, 1024 }
 0x41d   : > { %p1970_p13 = scmp.ne.s32.totalorder %s2918_s30, %s1969_s13  ;;  %s2115_s26 = smov [#allocation9]  }
 0x41e   : > { %s1973_s15 = sshll.u32 %s2115_s26, 4  ;;  %s1974_s15 = int_to_ptr.vmem [resolvable:$false] %s1973_s15 }
 0x41f   : > { %p1971_p2 = pnand %p1970_p13, %p3072_p9  ;;  %s1975_s22 = scalar_lea.vmem %s1974_s15, 2048 }
 0x420   : > { %p1976_p10 = scmp.lt.s32.totalorder %s2918_s30, %s1974_s15  ;;  %p1977_p0 = scmp.lt.s32.totalorder %s1975_s22, %s1969_s13 }
 0x421   : > { %s2915_s11 = scalar_lea.hbm %s3073_s6, %s1456_s21  ;;  %p1972_p5 = pneg %p1971_p2 }
 0x422   : > { %p1978_p1 = por %p1977_p0, %p1976_p10 }
 0x424   : > { %p1979_p8 = pnand %p1978_p1, %p1972_p5 }
 0x426   : > { %1982 = shalt.err (!%p1979_p8)
}
 0x427   : > { %s1983_s1 = scalar_lea.hbm %s2915_s11, 1024  ;;  %s1987_s7 = scalar_lea.hbm %s3073_s6, 4096 }
 0x428   : > { %p1984_p7 = scmp.ne.s32.totalorder %s2915_s11, %s1983_s1  ;;  %p1988_p4 = scmp.lt.u32.totalorder %s2915_s11, %s3073_s6 }
 0x429   : > { %p1989_p12 = scmp.lt.u32.totalorder %s1987_s7, %s1983_s1  ;;  %p1991_p13 = scmp.lt.u32.totalorder %s1983_s1, %s2915_s11 }
 0x42a   : > { %p1985_p11 = pnand %p1984_p7, %p3072_p9 }
 0x42b   : > { %p1990_p6 = por %p1989_p12, %p1988_p4 }
 0x42c   : > { %p1986_p3 = pneg %p1985_p11 }
 0x42d   : > { %p1992_p2 = por %p1991_p13, %p1990_p6 }
 0x42f   : > { %p1993_p5 = pnand %p1992_p2, %p1986_p3 }
 0x431   : > { %1996 = shalt.err (!%p1993_p5)
}
 0x432   : > { %1593 = dma.vmem_to_hbm [thread:$0]  (%p3072_p9), %s2918_s30, 1024, %s2915_s11, %s1220_s8, %s2113_s4, %s2113_s4, %s2114_s9  }
 0x433 PF: > { %s3074_s0 = sld [smem:[#allocation16_spill]]  ;;  %s3075_s12 = sld [smem:[#allocation17_spill]] }
 0x434   : > { %p1617_p10 = scmp.ge.s32.totalorder %s2103_s25, 2 }
 0x439   : > { %s1264_s13 = sand.u32 1, %s3074_s0   ;;  %p3076_p0 = scmp.ne.s32.totalorder %s3075_s12, 0 }
 0x43a   : > { %s1265_s26 = scalar_lea.sflag [#allocation4], %s1264_s13 }
 0x43b   : > { %p1608_p1 = pnand %p1617_p10, %p3076_p0 }
 0x43d   : > { %2054 = dma.done.wait (!%p1608_p1), %s1265_s26, 1024  }
 0x43e   : > { %2056 = vsyncadd (!%p1608_p1), %s1265_s26, 4294966272  ;;  %s1274_s10 = scalar_lea.sflag [#allocation10], %s1264_s13 }
 0x43f   : > { %2058 = dma.done.wait (!%p1608_p1), %s1274_s10, 1024  }
 0x440   : > { %2060 = vsyncadd (!%p1608_p1), %s1274_s10, 4294966272  ;;  %s25_s25 = sadd.s32 1, %s2103_s25   ;;  %s3077_s14 = sld [smem:[#allocation18_spill]] }
 0x441   : > { %p22_p8 = scmp.ge.s32.totalorder %s25_s25, 10   ;;  %s3078_s4 = sld [smem:[#allocation19_spill]] }
 0x442   : > { %s3079_s15 = smov %s2067_s16  ;;  %s3080_s16 = smov %s2071_s17 }
 0x443   : > { %s3081_s17 = smov %s2351_s28  ;;  %s3082_s18 = smov %s2079_s19 }
 0x444   : > { %s3083_s19 = smov %s2083_s20  ;;  %s3084_s20 = smov %s2369_s29 }
 0x445   : > { %s3085_s21 = smov %s2095_s23  ;;  %s3086_s22 = smov %s2099_s24 }
 0x446   : > { %s3087_s23 = smov %s3077_s14  ;;  %24 = sbr.rel (!%p22_p8) target bundleno = 16 (0x10), region = 134 }
 0x447   : > { %s3088_s24 = smov %s3078_s4 }
 0x44d   :  { %1279 = vsyncpa [#allocation3], 1 }
 0x44e   :  { %1281 = vsyncpa [#allocation3 + $0x1], 1 }
 0x44f   :  { %1282 = vsyncpa [#allocation6], 1 }
 0x450   :  { %1284 = vsyncpa [#allocation6 + $0x1], 1 }
 0x451   :  { %1285 = vsyncpa [#allocation4], 1 }
 0x452   :  { %1287 = vsyncpa [#allocation4 + $0x1], 1 }
 0x453   :  { %1288 = vsyncpa [#allocation10], 1 }
 0x454   :  { %1290 = vsyncpa [#allocation10 + $0x1], 1 }

</bundles_post_ra>
